<compile_context>
chip_gen: v7x
topology: tpu7x:2x2x1
jax: 0.10.0
libtpu: 0.0.40
codegen_flags: <defaults>
</compile_context>

<pallas_src>
import functools

import jax
import jax.numpy as jnp
from jax.experimental import pallas as pl
from jax.experimental.pallas import tpu as pltpu

# ---------------- small synthetic ChatGLM config ----------------
VOCAB = 256           # padded_vocab_size
HIDDEN = 128          # hidden_size (lane-dense: last dim == 128)
NUM_HEADS = 4         # num_attention_heads
HEAD_DIM = HIDDEN // NUM_HEADS            # 32
NUM_KV_HEADS = 2      # multi_query_group_num (multi_query_attention=True)
FFN = 256             # ffn_hidden_size
NUM_LAYERS = 2        # num_layers
EPS = 1e-5            # layernorm_epsilon
ROPE_BASE = 10000.0   # 10000 * rope_ratio(=1.0)
ROTARY_DIM = HEAD_DIM // 2                # 16 (partial rotary)
T = 8                 # number of real tokens (flattened batch*seq)

Q_SIZE = NUM_HEADS * HEAD_DIM             # 128
KV_SIZE = NUM_KV_HEADS * HEAD_DIM         # 64
QKV_OUT = Q_SIZE + 2 * KV_SIZE            # 256
GROUP = NUM_HEADS // NUM_KV_HEADS         # 2


# ---------------- whole-stack fused kernel ----------------
def _glm_stack_kernel(x_in_ref, pos_q_ref, seq_q_ref, pos_k_ref, seq_k_ref,
                      cos_ref, sin_ref, swap_ref,
                      ln1_ref, qkv_w_ref, qkv_b_ref, dense_w_ref,
                      ln2_ref, gate_w_ref, up_w_ref, fhh_w_ref, final_ln_ref,
                      o_ref, x_res_ref, *,
                      num_heads, num_kv_heads, head_dim, eps):
    layer = pl.program_id(0)
    t_pad = x_in_ref.shape[0]
    group = num_heads // num_kv_heads
    q_size = num_heads * head_dim
    kv_size = num_kv_heads * head_dim

    # Residual stream lives in VMEM scratch for the whole layer grid.
    @pl.when(layer == 0)
    def _():
        x_res_ref[...] = x_in_ref[...]

    x = x_res_ref[...]                                           # [T, H] f32

    # Additive causal / same-sequence bias built in-kernel from tiny vectors.
    # Rows are head-major stacked queries ([group*T, T]); shared by all groups.
    allowed = ((pos_k_ref[...] <= pos_q_ref[...]) &
               (seq_k_ref[...] == seq_q_ref[...]))
    bias = jnp.where(allowed, 0.0, -1e30).astype(jnp.float32)    # [group*T, T]

    # ---------------- attention sub-block ----------------
    var = jnp.mean(x * x, axis=-1, keepdims=True)
    ln1 = (x * jax.lax.rsqrt(var + eps) * ln1_ref[...]).astype(jnp.bfloat16)
    # fused QKV projection (bf16 MXU, f32 accumulation); only QKV has bias;
    # the attention scale is already folded into the q columns of W/b.
    qkv = jnp.dot(ln1, qkv_w_ref[...],
                  preferred_element_type=jnp.float32) + qkv_b_ref[...]

    # Full-width partial rotary: partner via one constant signed-swap matmul
    # (MXU), rotation via full-width cos/sin tables (1/0 on pass-through and v
    # columns).  No per-head lane slicing, no concatenates.
    partner = jnp.dot(qkv.astype(jnp.bfloat16), swap_ref[...],
                      preferred_element_type=jnp.float32)
    qkv_rot = (qkv * cos_ref[...] + partner * sin_ref[...]).astype(jnp.bfloat16)

    attn_out = jnp.zeros_like(x)                                 # [T, H] f32
    for g in range(num_kv_heads):
        # Stack this KV group's query heads along rows (head-major).
        qg = jnp.concatenate(
            [qkv_rot[:, (g * group + j) * head_dim:
                     (g * group + j + 1) * head_dim]
             for j in range(group)], axis=0)                     # [group*T, D]
        kg = qkv_rot[:, q_size + g * head_dim:
                     q_size + (g + 1) * head_dim]                # [T, D]
        vg = qkv_rot[:, q_size + kv_size + g * head_dim:
                     q_size + kv_size + (g + 1) * head_dim]      # [T, D]

        # scores for all heads of this group in one matmul (contraction on D)
        s = jax.lax.dot_general(qg, kg, (((1,), (1,)), ((), ())),
                                preferred_element_type=jnp.float32) + bias
        m = jnp.max(s, axis=-1, keepdims=True)
        p = jnp.exp(s - m)
        denom = jnp.sum(p, axis=-1, keepdims=True)
        ctx = jnp.dot(p.astype(jnp.bfloat16), vg,
                      preferred_element_type=jnp.float32)        # [group*T, D]
        ctx = ctx * pl.reciprocal(denom, approx=True)            # deferred norm
        # back to token-major [T, group*D] and accumulate the dense projection
        # for this KV group (no full lane concat of all heads).
        ctx = jnp.concatenate(
            [ctx[j * t_pad:(j + 1) * t_pad, :] for j in range(group)],
            axis=1).astype(jnp.bfloat16)
        attn_out = attn_out + jnp.dot(
            ctx,
            dense_w_ref[g * group * head_dim:(g + 1) * group * head_dim, :],
            preferred_element_type=jnp.float32)
    # pre-norm residual (apply_residual_connection_post_layernorm=False)
    x = x + attn_out

    # ---------------- MLP sub-block ----------------
    var2 = jnp.mean(x * x, axis=-1, keepdims=True)
    ln2 = (x * jax.lax.rsqrt(var2 + eps) * ln2_ref[...]).astype(jnp.bfloat16)
    gate = jnp.dot(ln2, gate_w_ref[...], preferred_element_type=jnp.float32)
    up = jnp.dot(ln2, up_w_ref[...], preferred_element_type=jnp.float32)
    act = (gate * jax.nn.sigmoid(gate) * up).astype(jnp.bfloat16)  # SiluAndMul
    x = x + jnp.dot(act, fhh_w_ref[...], preferred_element_type=jnp.float32)

    x_res_ref[...] = x

    # final_layernorm (post_layer_norm=True), folded into the last iteration.
    @pl.when(layer == pl.num_programs(0) - 1)
    def _():
        var3 = jnp.mean(x * x, axis=-1, keepdims=True)
        o_ref[...] = x * jax.lax.rsqrt(var3 + eps) * final_ln_ref[...]


def _glm_stack(x, pos_q, seq_q, pos_k, seq_k, cos_full, sin_full, params):
    t_pad, hdim = x.shape
    kernel = functools.partial(
        _glm_stack_kernel, num_heads=NUM_HEADS, num_kv_heads=NUM_KV_HEADS,
        head_dim=HEAD_DIM, eps=EPS)

    def full_spec(a):
        nd = a.ndim
        return pl.BlockSpec(a.shape, lambda l, _nd=nd: (0,) * _nd)

    def layer_spec(a):
        nd = a.ndim
        return pl.BlockSpec((None,) + a.shape[1:],
                            lambda l, _nd=nd: (l,) + (0,) * (_nd - 1))

    shared = (x, pos_q, seq_q, pos_k, seq_k, cos_full, sin_full,
              params["rope_swap"])
    per_layer = (params["ln1_w"], params["qkv_w"], params["qkv_b"],
                 params["dense_w"], params["ln2_w"], params["gate_w"],
                 params["up_w"], params["fhh_w"])
    final = (params["final_ln_w"],)

    in_specs = ([full_spec(a) for a in shared]
                + [layer_spec(a) for a in per_layer]
                + [full_spec(a) for a in final])

    grid_spec = pltpu.PrefetchScalarGridSpec(
        num_scalar_prefetch=0,
        grid=(NUM_LAYERS,),
        in_specs=in_specs,
        out_specs=pl.BlockSpec((t_pad, hdim), lambda l: (0, 0)),
        scratch_shapes=[pltpu.VMEM((t_pad, hdim), jnp.float32)])

    return pl.pallas_call(
        kernel,
        out_shape=jax.ShapeDtypeStruct((t_pad, hdim), jnp.float32),
        grid_spec=grid_spec,
        compiler_params=pltpu.CompilerParams(
            dimension_semantics=("arbitrary",)),
    )(*shared, *per_layer, *final)


# ---------------- JAX glue: rotary tables / swap matrix ----------------
def _rope_full_tables(positions):
    """Full-width cos/sin over the QKV output columns ([T, QKV_OUT]).

    Rotary columns of every q/k head carry cos/sin of the pair frequency;
    pass-through columns and all v columns carry cos=1 / sin=0."""
    t = positions.shape[0]
    half = ROTARY_DIM // 2
    inv_freq = 1.0 / (ROPE_BASE ** (
        jnp.arange(half, dtype=jnp.float32) * 2.0 / ROTARY_DIM))
    theta = positions.astype(jnp.float32)[:, None] * inv_freq[None, :]
    pass_w = HEAD_DIM - ROTARY_DIM
    cos_h = jnp.concatenate([jnp.cos(theta), jnp.cos(theta),
                             jnp.ones((t, pass_w), jnp.float32)], axis=-1)
    sin_h = jnp.concatenate([jnp.sin(theta), jnp.sin(theta),
                             jnp.zeros((t, pass_w), jnp.float32)], axis=-1)
    n_qk = NUM_HEADS + NUM_KV_HEADS
    cos_full = jnp.concatenate([jnp.tile(cos_h, (1, n_qk)),
                                jnp.ones((t, KV_SIZE), jnp.float32)], axis=-1)
    sin_full = jnp.concatenate([jnp.tile(sin_h, (1, n_qk)),
                                jnp.zeros((t, KV_SIZE), jnp.float32)], axis=-1)
    return cos_full, sin_full


def _build_rope_swap():
    """Constant [QKV_OUT, QKV_OUT] signed swap matrix: for every q/k head in
    neox (x1|x2|pass) order, partner col i = -x2[i], partner col half+i = +x1[i];
    pass-through and v columns are zero.  Shared by all layers."""
    half = ROTARY_DIM // 2
    n_qk = NUM_HEADS + NUM_KV_HEADS
    m = jnp.zeros((QKV_OUT, QKV_OUT), jnp.float32)
    head_off = jnp.arange(n_qk) * HEAD_DIM
    i = jnp.arange(half)
    rows_lo = (head_off[:, None] + i[None, :]).reshape(-1)        # x1 columns
    rows_hi = (head_off[:, None] + half + i[None, :]).reshape(-1)  # x2 columns
    m = m.at[rows_hi, rows_lo].set(-1.0)   # col i      <- -x2[i]
    m = m.at[rows_lo, rows_hi].set(1.0)    # col half+i <- +x1[i]
    return m.astype(jnp.bfloat16)


# ---------------- parameter preparation (deterministic, synthetic) ----------------
def _prep_qkv(qkv_w, qkv_b):
    """Permute q/k columns of the fused QKV weight/bias from interleaved
    (is_neox_style=False) rotary order to (x1 | x2 | pass) order and fold the
    1/sqrt(head_dim) attention scale into the q columns.  q.k^T is invariant
    under the shared per-head permutation, so the forward is equivalent."""
    per_head = jnp.concatenate([
        jnp.arange(0, ROTARY_DIM, 2),
        jnp.arange(1, ROTARY_DIM, 2),
        jnp.arange(ROTARY_DIM, HEAD_DIM)])
    q_perm = (jnp.arange(NUM_HEADS)[:, None] * HEAD_DIM
              + per_head[None, :]).reshape(-1)
    k_perm = Q_SIZE + (jnp.arange(NUM_KV_HEADS)[:, None] * HEAD_DIM
                       + per_head[None, :]).reshape(-1)
    v_cols = Q_SIZE + KV_SIZE + jnp.arange(KV_SIZE)
    perm = jnp.concatenate([q_perm, k_perm, v_cols])
    scale = jnp.concatenate([
        jnp.full((Q_SIZE,), HEAD_DIM ** -0.5, jnp.float32),
        jnp.ones((2 * KV_SIZE,), jnp.float32)])
    return qkv_w[:, perm] * scale[None, :], qkv_b[:, perm] * scale[None, :]


def init_params(key):
    scale = 0.02
    keys = jax.random.split(key, 1 + NUM_LAYERS)
    embed = jax.random.normal(keys[0], (VOCAB, HIDDEN), jnp.float32) * scale
    qkv_ws, qkv_bs, dense_ws, gate_ws, up_ws, fhh_ws = [], [], [], [], [], []
    for i in range(NUM_LAYERS):
        lk = jax.random.split(keys[1 + i], 5)
        qkv_w = jax.random.normal(lk[0], (HIDDEN, QKV_OUT), jnp.float32) * scale
        qkv_b = jax.random.normal(lk[1], (1, QKV_OUT), jnp.float32) * scale
        qkv_w, qkv_b = _prep_qkv(qkv_w, qkv_b)
        h4h = jax.random.normal(lk[3], (HIDDEN, 2 * FFN), jnp.float32) * scale
        qkv_ws.append(qkv_w)
        qkv_bs.append(qkv_b)
        dense_ws.append(
            jax.random.normal(lk[2], (Q_SIZE, HIDDEN), jnp.float32) * scale)
        gate_ws.append(h4h[:, :FFN])     # MergedColumnParallelLinear: [gate|up]
        up_ws.append(h4h[:, FFN:])
        fhh_ws.append(
            jax.random.normal(lk[4], (FFN, HIDDEN), jnp.float32) * scale)
    return {
        "embed": embed,
        "ln1_w": jnp.ones((NUM_LAYERS, 1, HIDDEN), jnp.float32),
        "ln2_w": jnp.ones((NUM_LAYERS, 1, HIDDEN), jnp.float32),
        "final_ln_w": jnp.ones((1, HIDDEN), jnp.float32),
        "qkv_w": jnp.stack(qkv_ws).astype(jnp.bfloat16),      # [L, H, 256]
        "qkv_b": jnp.stack(qkv_bs),                           # [L, 1, 256] f32
        "dense_w": jnp.stack(dense_ws).astype(jnp.bfloat16),  # [L, 128, H]
        "gate_w": jnp.stack(gate_ws).astype(jnp.bfloat16),    # [L, H, FFN]
        "up_w": jnp.stack(up_ws).astype(jnp.bfloat16),        # [L, H, FFN]
        "fhh_w": jnp.stack(fhh_ws).astype(jnp.bfloat16),      # [L, FFN, H]
        "rope_swap": _build_rope_swap(),                      # [256, 256] bf16
    }


# ---------------- full forward (ChatGLMForCausalLM.forward -> hidden_states) ----------------
def chatglm_forward(params, input_ids, positions, seq_ids):
    t = input_ids.shape[0]
    t_pad = ((t + 15) // 16) * 16          # bf16 sublane packing: multiple of 16
    pad = t_pad - t
    if pad:
        # pad tokens are appended causally AFTER the real tokens (same seq),
        # so real queries never attend them and pad softmax rows stay nonempty.
        input_ids = jnp.concatenate(
            [input_ids, jnp.zeros((pad,), input_ids.dtype)])
        positions = jnp.concatenate(
            [positions, positions[-1] + jnp.arange(1, pad + 1,
                                                   dtype=positions.dtype)])
        seq_ids = jnp.concatenate(
            [seq_ids, jnp.full((pad,), seq_ids[-1], seq_ids.dtype)])

    # VocabParallelEmbedding (gather left to XLA)
    x = jnp.take(params["embed"], input_ids, axis=0)            # [T_pad, H]

    cos_full, sin_full = _rope_full_tables(positions)
    posf = positions.astype(jnp.float32)
    seqf = seq_ids.astype(jnp.float32)
    pos_q = jnp.tile(posf, GROUP).reshape(GROUP * t_pad, 1)     # head-major rows
    seq_q = jnp.tile(seqf, GROUP).reshape(GROUP * t_pad, 1)
    pos_k = posf.reshape(1, t_pad)
    seq_k = seqf.reshape(1, t_pad)

    hidden = _glm_stack(x, pos_q, seq_q, pos_k, seq_k,
                        cos_full, sin_full, params)
    return hidden[:t]


if __name__ == "__main__":
    key = jax.random.PRNGKey(0)
    pkey, ikey = jax.random.split(key)
    params = init_params(pkey)

    input_ids = jax.random.randint(ikey, (T,), 0, VOCAB, dtype=jnp.int32)
    positions = jnp.arange(T, dtype=jnp.int32)
    seq_ids = jnp.zeros((T,), jnp.int32)    # single sequence in this demo

    forward = jax.jit(chatglm_forward)
    hidden_states = forward(params, input_ids, positions, seq_ids)
    jax.block_until_ready(hidden_states)

    assert hidden_states.shape == (T, HIDDEN)
    assert bool(jnp.all(jnp.isfinite(hidden_states)))
    print("KERNEL_OK")
</pallas_src>

<mosaic_0001>
module attributes {stable_mosaic.version = 11 : i64} {
  func.func @_glm_stack_kernel(%arg0: i32, %arg1: memref<16x128xf32, #tpu.memory_space<vmem>>, %arg2: memref<32x1xf32, #tpu.memory_space<vmem>>, %arg3: memref<32x1xf32, #tpu.memory_space<vmem>>, %arg4: memref<1x16xf32, #tpu.memory_space<vmem>>, %arg5: memref<1x16xf32, #tpu.memory_space<vmem>>, %arg6: memref<16x256xf32, #tpu.memory_space<vmem>>, %arg7: memref<16x256xf32, #tpu.memory_space<vmem>>, %arg8: memref<256x256xbf16, #tpu.memory_space<vmem>>, %arg9: memref<1x1x128xf32, #tpu.memory_space<vmem>>, %arg10: memref<1x128x256xbf16, #tpu.memory_space<vmem>>, %arg11: memref<1x1x256xf32, #tpu.memory_space<vmem>>, %arg12: memref<1x128x128xbf16, #tpu.memory_space<vmem>>, %arg13: memref<1x1x128xf32, #tpu.memory_space<vmem>>, %arg14: memref<1x128x256xbf16, #tpu.memory_space<vmem>>, %arg15: memref<1x128x256xbf16, #tpu.memory_space<vmem>>, %arg16: memref<1x256x128xbf16, #tpu.memory_space<vmem>>, %arg17: memref<1x128xf32, #tpu.memory_space<vmem>>, %arg18: memref<16x128xf32, #tpu.memory_space<vmem>>, %arg19: memref<16x128xf32, #tpu.memory_space<vmem>>) attributes {dimension_semantics = [#tpu.dimension_semantics<arbitrary>], iteration_bounds = array<i64: 2>, scalar_prefetch = 0 : i64, scratch_operands = 1 : i64, tpu.core_type = #tpu.core_type<tc>, window_params = [{pipeline_mode = #tpu.pipeline_mode<synchronous>, transform_indices = @transform_0, window_bounds = array<i64: 16, 128>}, {pipeline_mode = #tpu.pipeline_mode<synchronous>, transform_indices = @transform_1, window_bounds = array<i64: 32, 1>}, {pipeline_mode = #tpu.pipeline_mode<synchronous>, transform_indices = @transform_2, window_bounds = array<i64: 32, 1>}, {pipeline_mode = #tpu.pipeline_mode<synchronous>, transform_indices = @transform_3, window_bounds = array<i64: 1, 16>}, {pipeline_mode = #tpu.pipeline_mode<synchronous>, transform_indices = @transform_4, window_bounds = array<i64: 1, 16>}, {pipeline_mode = #tpu.pipeline_mode<synchronous>, transform_indices = @transform_5, window_bounds = array<i64: 16, 256>}, {pipeline_mode = #tpu.pipeline_mode<synchronous>, transform_indices = @transform_6, window_bounds = array<i64: 16, 256>}, {pipeline_mode = #tpu.pipeline_mode<synchronous>, transform_indices = @transform_7, window_bounds = array<i64: 256, 256>}, {transform_indices = @transform_8, window_bounds = array<i64: 1, 1, 128>}, {transform_indices = @transform_9, window_bounds = array<i64: 1, 128, 256>}, {transform_indices = @transform_10, window_bounds = array<i64: 1, 1, 256>}, {transform_indices = @transform_11, window_bounds = array<i64: 1, 128, 128>}, {transform_indices = @transform_12, window_bounds = array<i64: 1, 1, 128>}, {transform_indices = @transform_13, window_bounds = array<i64: 1, 128, 256>}, {transform_indices = @transform_14, window_bounds = array<i64: 1, 128, 256>}, {transform_indices = @transform_15, window_bounds = array<i64: 1, 256, 128>}, {pipeline_mode = #tpu.pipeline_mode<synchronous>, transform_indices = @transform_16, window_bounds = array<i64: 1, 128>}, {pipeline_mode = #tpu.pipeline_mode<synchronous>, transform_indices = @transform_17, window_bounds = array<i64: 16, 128>}]} {
    %c0_i32 = arith.constant 0 : i32
    %0 = arith.cmpi eq, %arg0, %c0_i32 : i32
    %1 = arith.extui %0 : i1 to i32
    %c0_i32_0 = arith.constant 0 : i32
    %2 = arith.cmpi ne, %1, %c0_i32_0 : i32
    scf.if %2 {
      %c0_69 = arith.constant 0 : index
      %c0_70 = arith.constant 0 : index
      %142 = vector.load %arg1[%c0_69, %c0_70] : memref<16x128xf32, #tpu.memory_space<vmem>>, vector<16x128xf32>
      %c0_71 = arith.constant 0 : index
      %c0_72 = arith.constant 0 : index
      %143 = vector.load %arg19[%c0_71, %c0_72] : memref<16x128xf32, #tpu.memory_space<vmem>>, vector<16x128xf32>
      tpu.vector_store %arg19[%c0_71, %c0_72], %142 {strides = array<i32>} : memref<16x128xf32, #tpu.memory_space<vmem>>, vector<16x128xf32>,
    } else {
    }
    %c0 = arith.constant 0 : index
    %c0_1 = arith.constant 0 : index
    %3 = vector.load %arg19[%c0, %c0_1] : memref<16x128xf32, #tpu.memory_space<vmem>>, vector<16x128xf32>
    %c0_2 = arith.constant 0 : index
    %c0_3 = arith.constant 0 : index
    %4 = vector.load %arg4[%c0_2, %c0_3] : memref<1x16xf32, #tpu.memory_space<vmem>>, vector<1x16xf32>
    %c0_4 = arith.constant 0 : index
    %c0_5 = arith.constant 0 : index
    %5 = vector.load %arg2[%c0_4, %c0_5] : memref<32x1xf32, #tpu.memory_space<vmem>>, vector<32x1xf32>
    %6 = vector.broadcast %4 : vector<1x16xf32> to vector<32x16xf32>
    %7 = vector.broadcast %5 : vector<32x1xf32> to vector<32x16xf32>
    %8 = arith.cmpf ole, %6, %7 : vector<32x16xf32>
    %c0_6 = arith.constant 0 : index
    %c0_7 = arith.constant 0 : index
    %9 = vector.load %arg5[%c0_6, %c0_7] : memref<1x16xf32, #tpu.memory_space<vmem>>, vector<1x16xf32>
    %c0_8 = arith.constant 0 : index
    %c0_9 = arith.constant 0 : index
    %10 = vector.load %arg3[%c0_8, %c0_9] : memref<32x1xf32, #tpu.memory_space<vmem>>, vector<32x1xf32>
    %11 = vector.broadcast %9 : vector<1x16xf32> to vector<32x16xf32>
    %12 = vector.broadcast %10 : vector<32x1xf32> to vector<32x16xf32>
    %13 = arith.cmpf oeq, %11, %12 : vector<32x16xf32>
    %14 = arith.andi %8, %13 : vector<32x16xi1>
    %cst = arith.constant 0.000000e+00 : f32
    %cst_10 = arith.constant -1.000000e+30 : f32
    %15 = vector.broadcast %cst : f32 to vector<32x16xf32>
    %16 = vector.broadcast %cst_10 : f32 to vector<32x16xf32>
    %17 = arith.select %14, %15, %16 : vector<32x16xi1>, vector<32x16xf32>
    %18 = arith.mulf %3, %3 : vector<16x128xf32>
    %cst_11 = arith.constant dense<0.000000e+00> : vector<16xf32>
    %19 = vector.multi_reduction <add>, %18, %cst_11 [1] : vector<16x128xf32> to vector<16xf32>
    %20 = vector.shape_cast %19 : vector<16xf32> to vector<16x1xf32>
    %cst_12 = arith.constant 1.280000e+02 : f32
    %21 = vector.broadcast %cst_12 : f32 to vector<16x1xf32>
    %22 = arith.divf %20, %21 : vector<16x1xf32>
    %cst_13 = arith.constant 9.99999974E-6 : f32
    %23 = vector.broadcast %cst_13 : f32 to vector<16x1xf32>
    %24 = arith.addf %22, %23 : vector<16x1xf32>
    %25 = math.rsqrt %24 : vector<16x1xf32>
    %26 = vector.broadcast %25 : vector<16x1xf32> to vector<16x128xf32>
    %27 = arith.mulf %3, %26 : vector<16x128xf32>
    %c0_14 = arith.constant 0 : index
    %c0_15 = arith.constant 0 : index
    %c0_16 = arith.constant 0 : index
    %28 = vector.load %arg9[%c0_14, %c0_15, %c0_16] : memref<1x1x128xf32, #tpu.memory_space<vmem>>, vector<1x1x128xf32>
    %29 = vector.shape_cast %28 : vector<1x1x128xf32> to vector<1x128xf32>
    %30 = vector.broadcast %29 : vector<1x128xf32> to vector<16x128xf32>
    %31 = arith.mulf %27, %30 : vector<16x128xf32>
    %32 = arith.truncf %31 : vector<16x128xf32> to vector<16x128xbf16>
    %c0_17 = arith.constant 0 : index
    %c0_18 = arith.constant 0 : index
    %c0_19 = arith.constant 0 : index
    %33 = vector.load %arg10[%c0_17, %c0_18, %c0_19] : memref<1x128x256xbf16, #tpu.memory_space<vmem>>, vector<1x128x256xbf16>
    %34 = vector.shape_cast %33 : vector<1x128x256xbf16> to vector<128x256xbf16>
    %cst_20 = arith.constant dense<0.000000e+00> : vector<16x256xf32>
    %35 = tpu.matmul %32, %34, %cst_20 {dimension_numbers = #tpu.dot_dimension_numbers<[1], [0], [0], [1], [0, 0, 1, 1], [], []>} : vector<16x128xbf16>, vector<128x256xbf16>, vector<16x256xf32> -> vector<16x256xf32>
    %c0_21 = arith.constant 0 : index
    %c0_22 = arith.constant 0 : index
    %c0_23 = arith.constant 0 : index
    %36 = vector.load %arg11[%c0_21, %c0_22, %c0_23] : memref<1x1x256xf32, #tpu.memory_space<vmem>>, vector<1x1x256xf32>
    %37 = vector.shape_cast %36 : vector<1x1x256xf32> to vector<1x256xf32>
    %38 = vector.broadcast %37 : vector<1x256xf32> to vector<16x256xf32>
    %39 = arith.addf %35, %38 : vector<16x256xf32>
    %40 = arith.truncf %39 : vector<16x256xf32> to vector<16x256xbf16>
    %c0_24 = arith.constant 0 : index
    %c0_25 = arith.constant 0 : index
    %41 = vector.load %arg8[%c0_24, %c0_25] : memref<256x256xbf16, #tpu.memory_space<vmem>>, vector<256x256xbf16>
    %cst_26 = arith.constant dense<0.000000e+00> : vector<16x256xf32>
    %42 = tpu.matmul %40, %41, %cst_26 {dimension_numbers = #tpu.dot_dimension_numbers<[1], [0], [0], [1], [0, 0, 1, 1], [], []>} : vector<16x256xbf16>, vector<256x256xbf16>, vector<16x256xf32> -> vector<16x256xf32>
    %c0_27 = arith.constant 0 : index
    %c0_28 = arith.constant 0 : index
    %43 = vector.load %arg6[%c0_27, %c0_28] : memref<16x256xf32, #tpu.memory_space<vmem>>, vector<16x256xf32>
    %44 = arith.mulf %39, %43 : vector<16x256xf32>
    %c0_29 = arith.constant 0 : index
    %c0_30 = arith.constant 0 : index
    %45 = vector.load %arg7[%c0_29, %c0_30] : memref<16x256xf32, #tpu.memory_space<vmem>>, vector<16x256xf32>
    %46 = arith.mulf %42, %45 : vector<16x256xf32>
    %47 = arith.addf %44, %46 : vector<16x256xf32>
    %48 = arith.truncf %47 : vector<16x256xf32> to vector<16x256xbf16>
    %cst_31 = arith.constant 0.000000e+00 : f32
    %49 = vector.broadcast %cst_31 : f32 to vector<16x128xf32>
    %50 = vector.extract_strided_slice %48 {offsets = [0, 0], sizes = [16, 32], strides = [1, 1]} : vector<16x256xbf16> to vector<16x32xbf16>
    %51 = vector.extract_strided_slice %48 {offsets = [0, 32], sizes = [16, 32], strides = [1, 1]} : vector<16x256xbf16> to vector<16x32xbf16>
    %52 = tpu.concatenate %50, %51 in 0 : vector<16x32xbf16>, vector<16x32xbf16> -> vector<32x32xbf16>
    %53 = vector.extract_strided_slice %48 {offsets = [0, 128], sizes = [16, 32], strides = [1, 1]} : vector<16x256xbf16> to vector<16x32xbf16>
    %54 = vector.extract_strided_slice %48 {offsets = [0, 192], sizes = [16, 32], strides = [1, 1]} : vector<16x256xbf16> to vector<16x32xbf16>
    %cst_32 = arith.constant dense<0.000000e+00> : vector<32x16xf32>
    %55 = tpu.matmul %52, %53, %cst_32 {dimension_numbers = #tpu.dot_dimension_numbers<[1], [1], [0], [0], [0, 0, 1, 0], [], []>} : vector<32x32xbf16>, vector<16x32xbf16>, vector<32x16xf32> -> vector<32x16xf32>
    %56 = arith.addf %55, %17 : vector<32x16xf32>
    %cst_33 = arith.constant dense<0xFF800000> : vector<32xf32>
    %57 = vector.multi_reduction <maximumf>, %56, %cst_33 [1] : vector<32x16xf32> to vector<32xf32>
    %58 = vector.shape_cast %57 : vector<32xf32> to vector<32x1xf32>
    %59 = vector.broadcast %58 : vector<32x1xf32> to vector<32x16xf32>
    %60 = arith.subf %56, %59 : vector<32x16xf32>
    %61 = math.exp %60 : vector<32x16xf32>
    %cst_34 = arith.constant dense<0.000000e+00> : vector<32xf32>
    %62 = vector.multi_reduction <add>, %61, %cst_34 [1] : vector<32x16xf32> to vector<32xf32>
    %63 = vector.shape_cast %62 : vector<32xf32> to vector<32x1xf32>
    %64 = arith.truncf %61 : vector<32x16xf32> to vector<32x16xbf16>
    %cst_35 = arith.constant dense<0.000000e+00> : vector<32x32xf32>
    %65 = tpu.matmul %64, %54, %cst_35 {dimension_numbers = #tpu.dot_dimension_numbers<[1], [0], [0], [1], [0, 0, 1, 1], [], []>} : vector<32x16xbf16>, vector<16x32xbf16>, vector<32x32xf32> -> vector<32x32xf32>
    %66 = tpu.reciprocal %63 {approx = true} : vector<32x1xf32> -> vector<32x1xf32>
    %67 = vector.broadcast %66 : vector<32x1xf32> to vector<32x32xf32>
    %68 = arith.mulf %65, %67 : vector<32x32xf32>
    %69 = vector.extract_strided_slice %68 {offsets = [0, 0], sizes = [16, 32], strides = [1, 1]} : vector<32x32xf32> to vector<16x32xf32>
    %70 = vector.extract_strided_slice %68 {offsets = [16, 0], sizes = [16, 32], strides = [1, 1]} : vector<32x32xf32> to vector<16x32xf32>
    %71 = tpu.concatenate %69, %70 in 1 : vector<16x32xf32>, vector<16x32xf32> -> vector<16x64xf32>
    %72 = arith.truncf %71 : vector<16x64xf32> to vector<16x64xbf16>
    %c0_36 = arith.constant 0 : index
    %c0_37 = arith.constant 0 : index
    %c0_38 = arith.constant 0 : index
    %73 = vector.load %arg12[%c0_36, %c0_37, %c0_38] : memref<1x128x128xbf16, #tpu.memory_space<vmem>>, vector<1x64x128xbf16>
    %74 = vector.shape_cast %73 : vector<1x64x128xbf16> to vector<64x128xbf16>
    %cst_39 = arith.constant dense<0.000000e+00> : vector<16x128xf32>
    %75 = tpu.matmul %72, %74, %cst_39 {dimension_numbers = #tpu.dot_dimension_numbers<[1], [0], [0], [1], [0, 0, 1, 1], [], []>} : vector<16x64xbf16>, vector<64x128xbf16>, vector<16x128xf32> -> vector<16x128xf32>
    %76 = arith.addf %49, %75 : vector<16x128xf32>
    %77 = vector.extract_strided_slice %48 {offsets = [0, 64], sizes = [16, 32], strides = [1, 1]} : vector<16x256xbf16> to vector<16x32xbf16>
    %78 = vector.extract_strided_slice %48 {offsets = [0, 96], sizes = [16, 32], strides = [1, 1]} : vector<16x256xbf16> to vector<16x32xbf16>
    %79 = tpu.concatenate %77, %78 in 0 : vector<16x32xbf16>, vector<16x32xbf16> -> vector<32x32xbf16>
    %80 = vector.extract_strided_slice %48 {offsets = [0, 160], sizes = [16, 32], strides = [1, 1]} : vector<16x256xbf16> to vector<16x32xbf16>
    %81 = vector.extract_strided_slice %48 {offsets = [0, 224], sizes = [16, 32], strides = [1, 1]} : vector<16x256xbf16> to vector<16x32xbf16>
    %cst_40 = arith.constant dense<0.000000e+00> : vector<32x16xf32>
    %82 = tpu.matmul %79, %80, %cst_40 {dimension_numbers = #tpu.dot_dimension_numbers<[1], [1], [0], [0], [0, 0, 1, 0], [], []>} : vector<32x32xbf16>, vector<16x32xbf16>, vector<32x16xf32> -> vector<32x16xf32>
    %83 = arith.addf %82, %17 : vector<32x16xf32>
    %cst_41 = arith.constant dense<0xFF800000> : vector<32xf32>
    %84 = vector.multi_reduction <maximumf>, %83, %cst_41 [1] : vector<32x16xf32> to vector<32xf32>
    %85 = vector.shape_cast %84 : vector<32xf32> to vector<32x1xf32>
    %86 = vector.broadcast %85 : vector<32x1xf32> to vector<32x16xf32>
    %87 = arith.subf %83, %86 : vector<32x16xf32>
    %88 = math.exp %87 : vector<32x16xf32>
    %cst_42 = arith.constant dense<0.000000e+00> : vector<32xf32>
    %89 = vector.multi_reduction <add>, %88, %cst_42 [1] : vector<32x16xf32> to vector<32xf32>
    %90 = vector.shape_cast %89 : vector<32xf32> to vector<32x1xf32>
    %91 = arith.truncf %88 : vector<32x16xf32> to vector<32x16xbf16>
    %cst_43 = arith.constant dense<0.000000e+00> : vector<32x32xf32>
    %92 = tpu.matmul %91, %81, %cst_43 {dimension_numbers = #tpu.dot_dimension_numbers<[1], [0], [0], [1], [0, 0, 1, 1], [], []>} : vector<32x16xbf16>, vector<16x32xbf16>, vector<32x32xf32> -> vector<32x32xf32>
    %93 = tpu.reciprocal %90 {approx = true} : vector<32x1xf32> -> vector<32x1xf32>
    %94 = vector.broadcast %93 : vector<32x1xf32> to vector<32x32xf32>
    %95 = arith.mulf %92, %94 : vector<32x32xf32>
    %96 = vector.extract_strided_slice %95 {offsets = [0, 0], sizes = [16, 32], strides = [1, 1]} : vector<32x32xf32> to vector<16x32xf32>
    %97 = vector.extract_strided_slice %95 {offsets = [16, 0], sizes = [16, 32], strides = [1, 1]} : vector<32x32xf32> to vector<16x32xf32>
    %98 = tpu.concatenate %96, %97 in 1 : vector<16x32xf32>, vector<16x32xf32> -> vector<16x64xf32>
    %99 = arith.truncf %98 : vector<16x64xf32> to vector<16x64xbf16>
    %c0_44 = arith.constant 0 : index
    %c64 = arith.constant 64 : index
    %c0_45 = arith.constant 0 : index
    %100 = vector.load %arg12[%c0_44, %c64, %c0_45] : memref<1x128x128xbf16, #tpu.memory_space<vmem>>, vector<1x64x128xbf16>
    %101 = vector.shape_cast %100 : vector<1x64x128xbf16> to vector<64x128xbf16>
    %cst_46 = arith.constant dense<0.000000e+00> : vector<16x128xf32>
    %102 = tpu.matmul %99, %101, %cst_46 {dimension_numbers = #tpu.dot_dimension_numbers<[1], [0], [0], [1], [0, 0, 1, 1], [], []>} : vector<16x64xbf16>, vector<64x128xbf16>, vector<16x128xf32> -> vector<16x128xf32>
    %103 = arith.addf %76, %102 : vector<16x128xf32>
    %104 = arith.addf %3, %103 : vector<16x128xf32>
    %105 = arith.mulf %104, %104 : vector<16x128xf32>
    %cst_47 = arith.constant dense<0.000000e+00> : vector<16xf32>
    %106 = vector.multi_reduction <add>, %105, %cst_47 [1] : vector<16x128xf32> to vector<16xf32>
    %107 = vector.shape_cast %106 : vector<16xf32> to vector<16x1xf32>
    %cst_48 = arith.constant 1.280000e+02 : f32
    %108 = vector.broadcast %cst_48 : f32 to vector<16x1xf32>
    %109 = arith.divf %107, %108 : vector<16x1xf32>
    %cst_49 = arith.constant 9.99999974E-6 : f32
    %110 = vector.broadcast %cst_49 : f32 to vector<16x1xf32>
    %111 = arith.addf %109, %110 : vector<16x1xf32>
    %112 = math.rsqrt %111 : vector<16x1xf32>
    %113 = vector.broadcast %112 : vector<16x1xf32> to vector<16x128xf32>
    %114 = arith.mulf %104, %113 : vector<16x128xf32>
    %c0_50 = arith.constant 0 : index
    %c0_51 = arith.constant 0 : index
    %c0_52 = arith.constant 0 : index
    %115 = vector.load %arg13[%c0_50, %c0_51, %c0_52] : memref<1x1x128xf32, #tpu.memory_space<vmem>>, vector<1x1x128xf32>
    %116 = vector.shape_cast %115 : vector<1x1x128xf32> to vector<1x128xf32>
    %117 = vector.broadcast %116 : vector<1x128xf32> to vector<16x128xf32>
    %118 = arith.mulf %114, %117 : vector<16x128xf32>
    %119 = arith.truncf %118 : vector<16x128xf32> to vector<16x128xbf16>
    %c0_53 = arith.constant 0 : index
    %c0_54 = arith.constant 0 : index
    %c0_55 = arith.constant 0 : index
    %120 = vector.load %arg14[%c0_53, %c0_54, %c0_55] : memref<1x128x256xbf16, #tpu.memory_space<vmem>>, vector<1x128x256xbf16>
    %121 = vector.shape_cast %120 : vector<1x128x256xbf16> to vector<128x256xbf16>
    %cst_56 = arith.constant dense<0.000000e+00> : vector<16x256xf32>
    %122 = tpu.matmul %119, %121, %cst_56 {dimension_numbers = #tpu.dot_dimension_numbers<[1], [0], [0], [1], [0, 0, 1, 1], [], []>} : vector<16x128xbf16>, vector<128x256xbf16>, vector<16x256xf32> -> vector<16x256xf32>
    %c0_57 = arith.constant 0 : index
    %c0_58 = arith.constant 0 : index
    %c0_59 = arith.constant 0 : index
    %123 = vector.load %arg15[%c0_57, %c0_58, %c0_59] : memref<1x128x256xbf16, #tpu.memory_space<vmem>>, vector<1x128x256xbf16>
    %124 = vector.shape_cast %123 : vector<1x128x256xbf16> to vector<128x256xbf16>
    %cst_60 = arith.constant dense<0.000000e+00> : vector<16x256xf32>
    %125 = tpu.matmul %119, %124, %cst_60 {dimension_numbers = #tpu.dot_dimension_numbers<[1], [0], [0], [1], [0, 0, 1, 1], [], []>} : vector<16x128xbf16>, vector<128x256xbf16>, vector<16x256xf32> -> vector<16x256xf32>
    %126 = arith.negf %122 : vector<16x256xf32>
    %127 = math.exp %126 : vector<16x256xf32>
    %cst_61 = arith.constant 1.000000e+00 : f32
    %128 = vector.broadcast %cst_61 : f32 to vector<16x256xf32>
    %129 = arith.addf %128, %127 : vector<16x256xf32>
    %130 = arith.divf %128, %129 : vector<16x256xf32>
    %131 = arith.mulf %122, %130 : vector<16x256xf32>
    %132 = arith.mulf %131, %125 : vector<16x256xf32>
    %133 = arith.truncf %132 : vector<16x256xf32> to vector<16x256xbf16>
    %c0_62 = arith.constant 0 : index
    %c0_63 = arith.constant 0 : index
    %c0_64 = arith.constant 0 : index
    %134 = vector.load %arg16[%c0_62, %c0_63, %c0_64] : memref<1x256x128xbf16, #tpu.memory_space<vmem>>, vector<1x256x128xbf16>
    %135 = vector.shape_cast %134 : vector<1x256x128xbf16> to vector<256x128xbf16>
    %cst_65 = arith.constant dense<0.000000e+00> : vector<16x128xf32>
    %136 = tpu.matmul %133, %135, %cst_65 {dimension_numbers = #tpu.dot_dimension_numbers<[1], [0], [0], [1], [0, 0, 1, 1], [], []>} : vector<16x256xbf16>, vector<256x128xbf16>, vector<16x128xf32> -> vector<16x128xf32>
    %137 = arith.addf %104, %136 : vector<16x128xf32>
    %c0_66 = arith.constant 0 : index
    %c0_67 = arith.constant 0 : index
    %138 = vector.load %arg19[%c0_66, %c0_67] : memref<16x128xf32, #tpu.memory_space<vmem>>, vector<16x128xf32>
    tpu.vector_store %arg19[%c0_66, %c0_67], %137 {strides = array<i32>} : memref<16x128xf32, #tpu.memory_space<vmem>>, vector<16x128xf32>,
    %c1_i32 = arith.constant 1 : i32
    %139 = arith.cmpi eq, %arg0, %c1_i32 : i32
    %140 = arith.extui %139 : i1 to i32
    %c0_i32_68 = arith.constant 0 : i32
    %141 = arith.cmpi ne, %140, %c0_i32_68 : i32
    scf.if %141 {
      %142 = arith.mulf %137, %137 : vector<16x128xf32>
      %cst_69 = arith.constant dense<0.000000e+00> : vector<16xf32>
      %143 = vector.multi_reduction <add>, %142, %cst_69 [1] : vector<16x128xf32> to vector<16xf32>
      %144 = vector.shape_cast %143 : vector<16xf32> to vector<16x1xf32>
      %cst_70 = arith.constant 1.280000e+02 : f32
      %145 = vector.broadcast %cst_70 : f32 to vector<16x1xf32>
      %146 = arith.divf %144, %145 : vector<16x1xf32>
      %cst_71 = arith.constant 9.99999974E-6 : f32
      %147 = vector.broadcast %cst_71 : f32 to vector<16x1xf32>
      %148 = arith.addf %146, %147 : vector<16x1xf32>
      %149 = math.rsqrt %148 : vector<16x1xf32>
      %150 = vector.broadcast %149 : vector<16x1xf32> to vector<16x128xf32>
      %151 = arith.mulf %137, %150 : vector<16x128xf32>
      %c0_72 = arith.constant 0 : index
      %c0_73 = arith.constant 0 : index
      %152 = vector.load %arg17[%c0_72, %c0_73] : memref<1x128xf32, #tpu.memory_space<vmem>>, vector<1x128xf32>
      %153 = vector.broadcast %152 : vector<1x128xf32> to vector<16x128xf32>
      %154 = arith.mulf %151, %153 : vector<16x128xf32>
      %c0_74 = arith.constant 0 : index
      %c0_75 = arith.constant 0 : index
      %155 = vector.load %arg18[%c0_74, %c0_75] : memref<16x128xf32, #tpu.memory_space<vmem>>, vector<16x128xf32>
      tpu.vector_store %arg18[%c0_74, %c0_75], %154 {strides = array<i32>} : memref<16x128xf32, #tpu.memory_space<vmem>>, vector<16x128xf32>,
    } else {
    }
    return
  }
  func.func @transform_0(%arg0: i32) -> (i32, i32) {
    %c0_i32 = arith.constant 0 : i32
    %c0_i32_0 = arith.constant 0 : i32
    %c0_i32_1 = arith.constant 0 : i32
    return %c0_i32, %c0_i32_0 : i32, i32
  }
  func.func @transform_1(%arg0: i32) -> (i32, i32) {
    %c0_i32 = arith.constant 0 : i32
    %c0_i32_0 = arith.constant 0 : i32
    %c0_i32_1 = arith.constant 0 : i32
    return %c0_i32, %c0_i32_0 : i32, i32
  }
  func.func @transform_2(%arg0: i32) -> (i32, i32) {
    %c0_i32 = arith.constant 0 : i32
    %c0_i32_0 = arith.constant 0 : i32
    %c0_i32_1 = arith.constant 0 : i32
    return %c0_i32, %c0_i32_0 : i32, i32
  }
  func.func @transform_3(%arg0: i32) -> (i32, i32) {
    %c0_i32 = arith.constant 0 : i32
    %c0_i32_0 = arith.constant 0 : i32
    %c0_i32_1 = arith.constant 0 : i32
    return %c0_i32, %c0_i32_0 : i32, i32
  }
  func.func @transform_4(%arg0: i32) -> (i32, i32) {
    %c0_i32 = arith.constant 0 : i32
    %c0_i32_0 = arith.constant 0 : i32
    %c0_i32_1 = arith.constant 0 : i32
    return %c0_i32, %c0_i32_0 : i32, i32
  }
  func.func @transform_5(%arg0: i32) -> (i32, i32) {
    %c0_i32 = arith.constant 0 : i32
    %c0_i32_0 = arith.constant 0 : i32
    %c0_i32_1 = arith.constant 0 : i32
    return %c0_i32, %c0_i32_0 : i32, i32
  }
  func.func @transform_6(%arg0: i32) -> (i32, i32) {
    %c0_i32 = arith.constant 0 : i32
    %c0_i32_0 = arith.constant 0 : i32
    %c0_i32_1 = arith.constant 0 : i32
    return %c0_i32, %c0_i32_0 : i32, i32
  }
  func.func @transform_7(%arg0: i32) -> (i32, i32) {
    %c0_i32 = arith.constant 0 : i32
    %c0_i32_0 = arith.constant 0 : i32
    %c0_i32_1 = arith.constant 0 : i32
    return %c0_i32, %c0_i32_0 : i32, i32
  }
  func.func @transform_8(%arg0: i32) -> (i32, i32, i32) {
    %c0_i32 = arith.constant 0 : i32
    %c0_i32_0 = arith.constant 0 : i32
    %c0_i32_1 = arith.constant 0 : i32
    return %arg0, %c0_i32, %c0_i32_0 : i32, i32, i32
  }
  func.func @transform_9(%arg0: i32) -> (i32, i32, i32) {
    %c0_i32 = arith.constant 0 : i32
    %c0_i32_0 = arith.constant 0 : i32
    %c0_i32_1 = arith.constant 0 : i32
    return %arg0, %c0_i32, %c0_i32_0 : i32, i32, i32
  }
  func.func @transform_10(%arg0: i32) -> (i32, i32, i32) {
    %c0_i32 = arith.constant 0 : i32
    %c0_i32_0 = arith.constant 0 : i32
    %c0_i32_1 = arith.constant 0 : i32
    return %arg0, %c0_i32, %c0_i32_0 : i32, i32, i32
  }
  func.func @transform_11(%arg0: i32) -> (i32, i32, i32) {
    %c0_i32 = arith.constant 0 : i32
    %c0_i32_0 = arith.constant 0 : i32
    %c0_i32_1 = arith.constant 0 : i32
    return %arg0, %c0_i32, %c0_i32_0 : i32, i32, i32
  }
  func.func @transform_12(%arg0: i32) -> (i32, i32, i32) {
    %c0_i32 = arith.constant 0 : i32
    %c0_i32_0 = arith.constant 0 : i32
    %c0_i32_1 = arith.constant 0 : i32
    return %arg0, %c0_i32, %c0_i32_0 : i32, i32, i32
  }
  func.func @transform_13(%arg0: i32) -> (i32, i32, i32) {
    %c0_i32 = arith.constant 0 : i32
    %c0_i32_0 = arith.constant 0 : i32
    %c0_i32_1 = arith.constant 0 : i32
    return %arg0, %c0_i32, %c0_i32_0 : i32, i32, i32
  }
  func.func @transform_14(%arg0: i32) -> (i32, i32, i32) {
    %c0_i32 = arith.constant 0 : i32
    %c0_i32_0 = arith.constant 0 : i32
    %c0_i32_1 = arith.constant 0 : i32
    return %arg0, %c0_i32, %c0_i32_0 : i32, i32, i32
  }
  func.func @transform_15(%arg0: i32) -> (i32, i32, i32) {
    %c0_i32 = arith.constant 0 : i32
    %c0_i32_0 = arith.constant 0 : i32
    %c0_i32_1 = arith.constant 0 : i32
    return %arg0, %c0_i32, %c0_i32_0 : i32, i32, i32
  }
  func.func @transform_16(%arg0: i32) -> (i32, i32) {
    %c0_i32 = arith.constant 0 : i32
    %c0_i32_0 = arith.constant 0 : i32
    %c0_i32_1 = arith.constant 0 : i32
    return %c0_i32, %c0_i32_0 : i32, i32
  }
  func.func @transform_17(%arg0: i32) -> (i32, i32) {
    %c0_i32 = arith.constant 0 : i32
    %c0_i32_0 = arith.constant 0 : i32
    %c0_i32_1 = arith.constant 0 : i32
    return %c0_i32, %c0_i32_0 : i32, i32
  }
}

</mosaic_0001>

<bundles_post_ra>
// kernel: tile.24
= control target key start
LH: loop header
LB: loop body
LE: loop exit
PB: predicated region body
PF: predicated region fallthrough
CT: control target
= control target key end

     0   :  { %vm48_vm0 = vcmask 1047556   ;;  %vm3_vm1 = vcmask 261120   ;;  %s171_s14 = smov 64   ;;  %s172_s19 = smov 96   ;;  %vm52_vm2 = vcmask 1048320   ;;  %vm73_vm3 = vcmask 785920   ;;  %s340_s0 = inlined_call_operand.vmem [shape: f32[16,6,32], index: 0, kind: input, shape index: {}]   ;;  %s341_s1 = inlined_call_operand.vmem [shape: f32[16,192], index: 1, kind: output, shape index: {}]  }
   0x1   :  { %v152_v0 = vld [vmem:[%s340_s0 + $0x2] ss:$8 sm:$0xf]   ;;  %v147_v3 = vld [vmem:[%s340_s0 + $0x3] ss:$8 sm:$0xf]  }
   0x2   :  { %v153_v1 = vld [vmem:[%s340_s0 + $0x2] ss:$8 sm:$0xf0]   ;;  %v148_v4 = vld [vmem:[%s340_s0 + $0x3] ss:$8 sm:$0xf0]  }
   0x3   :  { %v70_v2 = vsel %vm48_vm0, %v153_v1, %v152_v0  ;;  %v49_v5 = vsel %vm48_vm0, %v148_v4, %v147_v3  ;;  %v154_v6 = vld [vmem:[%s340_s0 + $0x42] ss:$8 sm:$0xf]   ;;  %v149_v9 = vld [vmem:[%s340_s0 + $0x43] ss:$8 sm:$0xf]  }
   0x4   :  { %71 = vrot.lane.b32.xlu1 %v70_v2, %s171_s14  ;;  %v155_v7 = vld [vmem:[%s340_s0 + $0x42] ss:$8 sm:$0xf0]   ;;  %50 = vrot.lane.b32.xlu0 %v49_v5, %s172_s19  ;;  %v150_v10 = vld [vmem:[%s340_s0 + $0x43] ss:$8 sm:$0xf0]  }
   0x5   :  { %v80_v8 = vsel %vm48_vm0, %v155_v7, %v154_v6  ;;  %v59_v11 = vsel %vm48_vm0, %v150_v10, %v149_v9  ;;  %v159_v12 = vld [vmem:[%s340_s0 + $0x5] ss:$8 sm:$0xf]   ;;  %v2_v13 = vld [vmem:[%s340_s0] ss:$4 sm:$0xff]   ;;  %vm94_vm4 = vcmask 523520  }
   0x6   :  { %v160_v14 = vld [vmem:[%s340_s0 + $0x5] ss:$8 sm:$0xf0]   ;;  %v157_v15 = vld [vmem:[%s340_s0 + $0x1] ss:$8 sm:$0xf]  }
   0x7   :  { %4 = vst.msk [vmem:[%s341_s1] ss:$8 sm:$0x3] %vm3_vm1, %v2_v13   ;;  %129 = vst.msk [vmem:[%s341_s1 - $0xf] ss:$8 sm:$0xc] %vm3_vm1, %v2_v13   ;;  %v101_v18 = vsel %vm48_vm0, %v160_v14, %v159_v12 }
   0x8   :  { %130 = vst.msk [vmem:[%s341_s1 - $0x1e] ss:$8 sm:$0x30] %vm3_vm1, %v2_v13   ;;  %131 = vst.msk [vmem:[%s341_s1 - $0x2d] ss:$8 sm:$0xc0] %vm3_vm1, %v2_v13   ;;  %81 = vrot.lane.b32.xlu1 %v80_v8, %s171_s14  ;;  %60 = vrot.lane.b32.xlu0 %v59_v11, %s172_s19 }
   0x9   :  { %v158_v16 = vld [vmem:[%s340_s0 + $0x1] ss:$8 sm:$0xf0]   ;;  %v165_v17 = vld [vmem:[%s340_s0 + $0x45] ss:$8 sm:$0xf]  }
   0xa   :  { %v166_v19 = vld [vmem:[%s340_s0 + $0x45] ss:$8 sm:$0xf0]   ;;  %v162_v20 = vld [vmem:[%s340_s0 + $0x41] ss:$8 sm:$0xf]   ;;  %v91_v21 = vsel %vm48_vm0, %v158_v16, %v157_v15 }
   0xb   :  { %v163_v22 = vld [vmem:[%s340_s0 + $0x41] ss:$8 sm:$0xf0]   ;;  %v132_v23 = vld [vmem:[%s340_s0 + $0x20] ss:$4 sm:$0xff]   ;;  %v123_v26 = vsel %vm48_vm0, %v166_v19, %v165_v17 }
   0xc   :  { %133 = vst.msk [vmem:[%s341_s1 + $0x4] ss:$8 sm:$0x3] %vm3_vm1, %v132_v23   ;;  %134 = vst.msk [vmem:[%s341_s1 - $0xb] ss:$8 sm:$0xc] %vm3_vm1, %v132_v23   ;;  %v112_v27 = vsel %vm48_vm0, %v163_v22, %v162_v20 }
   0xd   :  { %135 = vst.msk [vmem:[%s341_s1 - $0x1a] ss:$8 sm:$0x30] %vm3_vm1, %v132_v23   ;;  %136 = vst.msk [vmem:[%s341_s1 - $0x29] ss:$8 sm:$0xc0] %vm3_vm1, %v132_v23  }
   0xe   :  { %v137_v24 = vld [vmem:[%s340_s0 + $0x40] ss:$4 sm:$0xff]  }
   0xf   :  { %v142_v25 = vld [vmem:[%s340_s0 + $0x60] ss:$4 sm:$0xff]   ;;  %s173_s0 = smov 32   ;;  %138 = vst.msk [vmem:[%s341_s1 + $0x10] ss:$8 sm:$0x3] %vm3_vm1, %v137_v24  }
  0x10   :  { %102 = vrot.lane.b32.xlu1 %v101_v18, %s173_s0  ;;  %139 = vst.msk [vmem:[%s341_s1 + $0x1] ss:$8 sm:$0xc] %vm3_vm1, %v137_v24   ;;  %140 = vst.msk [vmem:[%s341_s1 - $0xe] ss:$8 sm:$0x30] %vm3_vm1, %v137_v24   ;;  %92 = vrot.lane.b32.xlu0 %v91_v21, %s173_s0 }
  0x11   :  { %141 = vst.msk [vmem:[%s341_s1 - $0x1d] ss:$8 sm:$0xc0] %vm3_vm1, %v137_v24   ;;  %143 = vst.msk [vmem:[%s341_s1 + $0x14] ss:$8 sm:$0x3] %vm3_vm1, %v142_v25  }
  0x12   :  { %144 = vst.msk [vmem:[%s341_s1 + $0x5] ss:$8 sm:$0xc] %vm3_vm1, %v142_v25   ;;  %145 = vst.msk [vmem:[%s341_s1 - $0xa] ss:$8 sm:$0x30] %vm3_vm1, %v142_v25  }
  0x13   :  { %146 = vst.msk [vmem:[%s341_s1 - $0x19] ss:$8 sm:$0xc0] %vm3_vm1, %v142_v25  }
  0x14   :  { %124 = vrot.lane.b32.xlu1 %v123_v26, %s173_s0  ;;  %113 = vrot.lane.b32.xlu0 %v112_v27, %s173_s0 }
  0x76   :  { %v72_v28 = vpop.permute.xlu1 %71   ;;  %v51_v29 = vpop.permute.xlu0 %50  }
  0x77   :  { %53 = vst.msk [vmem:[%s341_s1] sm:$0xff] %vm52_vm2, %v51_v29  }
  0x78   :  { %74 = vst.msk [vmem:[%s341_s1] sm:$0xff] %vm73_vm3, %v72_v28  }
  0x7a   :  { %v82_v30 = vpop.permute.xlu1 %81   ;;  %v61_v31 = vpop.permute.xlu0 %60  }
  0x7b   :  { %151 = vst.msk [vmem:[%s341_s1 + $0x10] sm:$0xff] %vm52_vm2, %v61_v31  }
  0x7c   :  { %156 = vst.msk [vmem:[%s341_s1 + $0x10] sm:$0xff] %vm73_vm3, %v82_v30  }
  0x82   :  { %v103_v32 = vpop.permute.xlu1 %102   ;;  %v93_v33 = vpop.permute.xlu0 %92  }
  0x83   :  { %161 = vst.msk [vmem:[%s341_s1 + $0x8] sm:$0xff] %vm94_vm4, %v103_v32   ;;  %95 = vst.msk [vmem:[%s341_s1] sm:$0xff] %vm94_vm4, %v93_v33  }
  0x86   :  { %v125_v34 = vpop.permute.xlu1 %124   ;;  %v114_v35 = vpop.permute.xlu0 %113  }
  0x87   :  { %167 = vst.msk [vmem:[%s341_s1 + $0x18] sm:$0xff] %vm94_vm4, %v125_v34   ;;  %164 = vst.msk [vmem:[%s341_s1 + $0x10] sm:$0xff] %vm94_vm4, %v114_v35  }

// kernel: tile.33
= control target key start
LH: loop header
LB: loop body
LE: loop exit
PB: predicated region body
PF: predicated region fallthrough
CT: control target
= control target key end

     0   :  { %s22_s0 = inlined_call_operand.vmem [shape: f32[16], index: 0, kind: input, shape index: {}]   ;;  %s23_s1 = inlined_call_operand.vmem [shape: f32[2,16], index: 1, kind: output, shape index: {}]  }
   0x1   :  { %v4_v0 = vld [vmem:[%s22_s0] ss:$0 sm:$0xff] }
   0x2   :  { %5 = vst [vmem:[%s23_s1] sm:$0x3] %v4_v0 }

// kernel: tile.0
= control target key start
LH: loop header
LB: loop body
LE: loop exit
PB: predicated region body
PF: predicated region fallthrough
CT: control target
= control target key end

     0   :  { %s130_s8 = smov 125   ;;  %s131_s9 = smov 126   ;;  %vm7_vm0 = vcmask 7168   ;;  %s221_s0 = inlined_call_operand.vmem [shape: f32[2,16], index: 0, kind: input, shape index: {}]   ;;  %s222_s1 = inlined_call_operand.vmem [shape: f32[32,1], index: 1, kind: output, shape index: {}]  }
   0x1   :  { %v4_v0 = vld [vmem:[%s221_s0] sm:$0x3]  ;;  %s129_s0 = smov 127   ;;  %s132_s10 = smov 124  }
   0x2   :  { %5 = vst [vmem:[#allocation0] sm:$0x3] %v4_v0  ;;  %s133_s11 = smov 123   ;;  %s134_s12 = smov 122  }
   0x3   :  { %s135_s13 = smov 121   ;;  %s136_s14 = smov 120  }
   0x4   :  { %s137_s17 = smov 119   ;;  %s138_s18 = smov 118  }
   0x5   :  { %s139_s19 = smov 117   ;;  %s140_s20 = smov 116  }
   0x6   :  { %s141_s21 = smov 115   ;;  %s142_s22 = smov 114  }
   0x7   :  { %s143_s23 = smov 113  }
   0x9   :  { %v9_v1 = vld [vmem:[#allocation0] sm:$0x3]  }
   0xa   :  { %v21_v2 = vld [vmem:[#allocation0] sm:$0x3]   ;;  %10 = vrot.lane.b32.xlu0 %v9_v1, %s129_s0 }
   0xb   :  { %22 = vrot.lane.b32.xlu1 %v21_v2, %s130_s8  ;;  %v15_v3 = vld [vmem:[#allocation0] sm:$0x3]  }
   0xc   :  { %v27_v4 = vld [vmem:[#allocation0] sm:$0x3]  }
   0xd   :  { %v33_v5 = vld [vmem:[#allocation0] sm:$0x3]  }
   0xe   :  { %16 = vrot.lane.b32.xlu0 %v15_v3, %s131_s9  ;;  %v39_v6 = vld [vmem:[#allocation0] sm:$0x3]  }
   0xf   :  { %28 = vrot.lane.b32.xlu1 %v27_v4, %s132_s10  ;;  %v45_v7 = vld [vmem:[#allocation0] sm:$0x3]  }
  0x10   :  { %v51_v8 = vld [vmem:[#allocation0] sm:$0x3]  }
  0x11   :  { %v57_v9 = vld [vmem:[#allocation0] sm:$0x3]  }
  0x12   :  { %34 = vrot.lane.b32.xlu0 %v33_v5, %s133_s11  ;;  %v63_v10 = vld [vmem:[#allocation0] sm:$0x3]  }
  0x13   :  { %40 = vrot.lane.b32.xlu1 %v39_v6, %s134_s12  ;;  %v6_v11 = vld [vmem:[#allocation0] sm:$0x3]  }
  0x14   :  { %8 = vst.msk [vmem:[%s222_s1] ss:$16 sm:$0x3] %vm7_vm0, %v6_v11   ;;  %v69_v12 = vld [vmem:[#allocation0] sm:$0x3]  }
  0x15   :  { %v75_v13 = vld [vmem:[#allocation0] sm:$0x3]  }
  0x16   :  { %46 = vrot.lane.b32.xlu0 %v45_v7, %s135_s13  ;;  %v81_v14 = vld [vmem:[#allocation0] sm:$0x3]  }
  0x17   :  { %52 = vrot.lane.b32.xlu1 %v51_v8, %s136_s14  ;;  %v87_v15 = vld [vmem:[#allocation0] sm:$0x3]  }
  0x18   :  { %v93_v16 = vld [vmem:[#allocation0] sm:$0x3]  }
  0x1a   :  { %58 = vrot.lane.b32.xlu0 %v57_v9, %s137_s17 }
  0x1b   :  { %64 = vrot.lane.b32.xlu1 %v63_v10, %s138_s18 }
  0x1e   :  { %70 = vrot.lane.b32.xlu0 %v69_v12, %s139_s19 }
  0x1f   :  { %76 = vrot.lane.b32.xlu1 %v75_v13, %s140_s20 }
  0x22   :  { %82 = vrot.lane.b32.xlu0 %v81_v14, %s141_s21 }
  0x23   :  { %88 = vrot.lane.b32.xlu1 %v87_v15, %s142_s22 }
  0x26   :  { %94 = vrot.lane.b32.xlu0 %v93_v16, %s143_s23 }
  0x7c   :  { %v11_v17 = vpop.permute.xlu0 %10  }
  0x7d   :  { %v23_v18 = vpop.permute.xlu1 %22   ;;  %99 = vst.msk [vmem:[%s222_s1 + $0x1] ss:$16 sm:$0x3] %vm7_vm0, %v11_v17  }
  0x7e   :  { %101 = vst.msk [vmem:[%s222_s1 + $0x3] ss:$16 sm:$0x3] %vm7_vm0, %v23_v18  }
  0x80   :  { %v17_v19 = vpop.permute.xlu0 %16  }
  0x81   :  { %v29_v20 = vpop.permute.xlu1 %28   ;;  %100 = vst.msk [vmem:[%s222_s1 + $0x2] ss:$16 sm:$0x3] %vm7_vm0, %v17_v19  }
  0x82   :  { %102 = vst.msk [vmem:[%s222_s1 + $0x4] ss:$16 sm:$0x3] %vm7_vm0, %v29_v20  }
  0x84   :  { %v35_v21 = vpop.permute.xlu0 %34  }
  0x85   :  { %v41_v22 = vpop.permute.xlu1 %40   ;;  %103 = vst.msk [vmem:[%s222_s1 + $0x5] ss:$16 sm:$0x3] %vm7_vm0, %v35_v21  }
  0x86   :  { %104 = vst.msk [vmem:[%s222_s1 + $0x6] ss:$16 sm:$0x3] %vm7_vm0, %v41_v22  }
  0x88   :  { %v47_v23 = vpop.permute.xlu0 %46  }
  0x89   :  { %v53_v24 = vpop.permute.xlu1 %52   ;;  %105 = vst.msk [vmem:[%s222_s1 + $0x7] ss:$16 sm:$0x3] %vm7_vm0, %v47_v23  }
  0x8a   :  { %106 = vst.msk [vmem:[%s222_s1 + $0x8] ss:$16 sm:$0x3] %vm7_vm0, %v53_v24  }
  0x8c   :  { %v59_v25 = vpop.permute.xlu0 %58  }
  0x8d   :  { %v65_v26 = vpop.permute.xlu1 %64   ;;  %107 = vst.msk [vmem:[%s222_s1 + $0x9] ss:$16 sm:$0x3] %vm7_vm0, %v59_v25  }
  0x8e   :  { %108 = vst.msk [vmem:[%s222_s1 + $0xa] ss:$16 sm:$0x3] %vm7_vm0, %v65_v26  }
  0x90   :  { %v71_v27 = vpop.permute.xlu0 %70  }
  0x91   :  { %v77_v28 = vpop.permute.xlu1 %76   ;;  %109 = vst.msk [vmem:[%s222_s1 + $0xb] ss:$16 sm:$0x3] %vm7_vm0, %v71_v27  }
  0x92   :  { %110 = vst.msk [vmem:[%s222_s1 + $0xc] ss:$16 sm:$0x3] %vm7_vm0, %v77_v28  }
  0x94   :  { %v83_v29 = vpop.permute.xlu0 %82  }
  0x95   :  { %v89_v30 = vpop.permute.xlu1 %88   ;;  %111 = vst.msk [vmem:[%s222_s1 + $0xd] ss:$16 sm:$0x3] %vm7_vm0, %v83_v29  }
  0x96   :  { %112 = vst.msk [vmem:[%s222_s1 + $0xe] ss:$16 sm:$0x3] %vm7_vm0, %v89_v30  }
  0x98   :  { %v95_v31 = vpop.permute.xlu0 %94  }
  0x99   :  { %113 = vst.msk [vmem:[%s222_s1 + $0xf] ss:$16 sm:$0x3] %vm7_vm0, %v95_v31  }

// kernel: chatglm_forward.1
= control target key start
LH: loop header
LB: loop body
LE: loop exit
PB: predicated region body
PF: predicated region fallthrough
CT: control target
= control target key end

     0   :  { %s3563_s0 = inlined_call_operand.vmem [shape: f32[16,128], index: 0, kind: input, shape index: {}]   ;;  %s3564_s1 = inlined_call_operand.vmem [shape: f32[32,1], index: 1, kind: input, shape index: {}]   ;;  %s3565_s2 = inlined_call_operand.vmem [shape: f32[32,1], index: 2, kind: input, shape index: {}]   ;;  %s3566_s3 = inlined_call_operand.vmem [shape: f32[1,16], index: 3, kind: input, shape index: {}]   ;;  %s3567_s4 = inlined_call_operand.vmem [shape: f32[1,16], index: 4, kind: input, shape index: {}]   ;;  %s3568_s5 = inlined_call_operand.vmem [shape: f32[16,256], index: 5, kind: input, shape index: {}]   ;;  %s3569_s6 = inlined_call_operand.vmem [shape: f32[16,256], index: 6, kind: input, shape index: {}]   ;;  %s3570_s7 = inlined_call_operand.vmem [shape: bf16[256,256], index: 7, kind: input, shape index: {}]   ;;  %s3571_s8 = inlined_call_operand.vmem [shape: f32[2,1,128], index: 8, kind: input, shape index: {}]   ;;  %s3572_s9 = inlined_call_operand.vmem [shape: bf16[2,128,256], index: 9, kind: input, shape index: {}]   ;;  %s3573_s10 = inlined_call_operand.vmem [shape: f32[2,1,256], index: 10, kind: input, shape index: {}]   ;;  %s3574_s11 = inlined_call_operand.vmem [shape: bf16[2,128,128], index: 11, kind: input, shape index: {}]   ;;  %s3575_s12 = inlined_call_operand.vmem [shape: f32[2,1,128], index: 12, kind: input, shape index: {}]   ;;  %s3576_s13 = inlined_call_operand.vmem [shape: bf16[2,128,256], index: 13, kind: input, shape index: {}]   ;;  %s3577_s14 = inlined_call_operand.vmem [shape: bf16[2,128,256], index: 14, kind: input, shape index: {}]   ;;  %s3578_s15 = inlined_call_operand.hbm [shape: bf16[2,256,128], index: 15, kind: input, shape index: {}]   ;;  %s3579_s16 = inlined_call_operand.vmem [shape: f32[1,128], index: 16, kind: input, shape index: {}]   ;;  %s3580_s17 = inlined_call_operand.vmem [shape: f32[16,128], index: 17, kind: output, shape index: {}]  }
   0x1   :  { %3589 = sst [smem:[#allocation11_spill]] %s3563_s0 }
   0x2   :  { %3590 = sst [smem:[#allocation12_spill]] %s3564_s1 }
   0x3   :  { %3591 = sst [smem:[#allocation13_spill]] %s3567_s4 }
   0x4   :  { %3592 = sst [smem:[#allocation14_spill]] %s3572_s9 }
   0x5   :  { %3593 = sst [smem:[#allocation15_spill]] %s3578_s15 }
   0x6   :  { %3594 = sst [smem:[#allocation16_spill]] %s3579_s16 }
   0x7   :  { %3595 = sst [smem:[#allocation17_spill]] %s3580_s17 }
   0x8   :  { %22 = vsyncpa [#allocation4], 0 }
   0x9   :  { %24 = vsyncpa [#allocation4 + $0x1], 0  ;;  %s3046_s24 = smov 0   ;;  %s3048_s25 = smov 0  }
   0xa   :  { %s3050_s26 = smov 0   ;;  %s3052_s27 = smov 0  }
   0xb LB: > { %3596 = sst [smem:[#allocation6_spill]] %s2936_s25  ;;  %s3065_s28 = sadd.s32 4294967295, %s2944_s27   ;;  %s2944_s27 = sphi %s3052_s27, %s3614_s27   ;;  %s2940_s26 = sphi %s3050_s26, %s3617_s26   ;;  %s2936_s25 = sphi %s3048_s25, %s3616_s25   ;;  %s2932_s24 = sphi %s3046_s24, %s3615_s24  }
   0xc   : > { %3597 = sst [smem:[#allocation7_spill]] %s2940_s26  ;;  %s3068_s29 = sadd.s32 1, %s2944_s27  }
   0xd   : > { %3598 = sst [smem:[#allocation8_spill]] %s3068_s29  ;;  %s384_s0 = ssub.s32 %s2944_s27, %s3068_s29 }
   0xe   : > { %s387_s30 = sadd.s32 1, %s2940_s26  ;;  %p385_p0 = scmp.eq.s32.totalorder %s384_s0, 0 }
   0xf   : > { %p394_p1 = scmp.ne.s32.totalorder %s2940_s26, %s2936_s25  ;;  %p395_p2 = scmp.eq.s32.totalorder %s2944_s27, 0 }
  0x10   : > { %p400_p3 = scmp.ne.s32.totalorder %s2936_s25, %s2932_s24  ;;  %p401_p5 = scmp.eq.s32.totalorder %s3065_s28, 0 }
  0x11   : > { %s3078_s18 = scalar_select %p385_p0, %s2940_s26, %s387_s30  }
  0x12   : > { %p396_p4 = por %p395_p2, %p394_p1  ;;  %p2620_p6 = scmp.lt.s32.totalorder %s2944_s27, 2 }
  0x13   : > { %3599 = sst [smem:[#allocation9_spill]] %s3078_s18  ;;  %p3082_p7 = por %p401_p5, %p400_p3 }
  0x14   : > { %s544_s1 = sand.u32 1, %s2940_s26   ;;  %s2515_s21 = sshll.u32 %s2944_s27, 11 }
  0x15   : > { %s2374_s20 = sshll.u32 %s544_s1, 7  ;;  %s3601_s15 = sld [smem:[#allocation15_spill]] }
  0x16   : > { %s548_s24 = scalar_lea.vmem [#allocation3], %s2374_s20  ;;  %p3095_p8 = pnand %p2620_p6, %p396_p4 }
  0x17   : > { %s555_s30 = sshll.u32 %s548_s24, 4  ;;  %s3100_s26 = scalar_lea.sflag [#allocation4], %s544_s1  ;;  %s3093_s30 = int_to_ptr.vmem [resolvable:$true] %s555_s30 }
  0x18   : > { %p2882_p11 = pneg %p3095_p8 }
  0x1b   : > { %s3091_s0 = scalar_lea.hbm %s3601_s15, %s2515_s21  ;;  %s2885_s23 = scalar_lea.hbm %s3601_s15, 4096 }
  0x1c   : > { %s2880_s22 = scalar_lea.hbm %s3091_s0, 2048  ;;  %p2886_p0 = scmp.lt.u32.totalorder %s3091_s0, %s3601_s15 }
  0x1d   : > { %p2881_p10 = scmp.ne.s32.totalorder %s3091_s0, %s2880_s22  ;;  %p2887_p1 = scmp.lt.u32.totalorder %s2885_s23, %s2880_s22 }
  0x1e   : > { %p2889_p3 = scmp.lt.u32.totalorder %s2880_s22, %s3091_s0 }
  0x1f   : > { %p2883_p12 = pnand %p2882_p11, %p2881_p10  ;;  %p2888_p2 = por %p2887_p1, %p2886_p0 }
  0x21   : > { %p2884_p13 = pneg %p2883_p12  ;;  %p2890_p4 = por %p2889_p3, %p2888_p2 }
  0x23   : > { %p2891_p5 = pnand %p2890_p4, %p2884_p13 }
  0x25   : > { %2894 = shalt.err (!%p2891_p5)
}
  0x26   : > { %s2895_s1 = scalar_lea.vmem %s3093_s30, 2048  ;;  %s2946_s20 = smov [#allocation3]  }
  0x27   : > { %p2896_p6 = scmp.ne.s32.totalorder %s3093_s30, %s2895_s1  ;;  %s2900_s21 = sshll.u32 %s2946_s20, 4  ;;  %s2901_s21 = int_to_ptr.vmem [resolvable:$false] %s2900_s21 }
  0x28   : > { %s2902_s29 = scalar_lea.vmem %s2901_s21, 4096  ;;  %p2903_p9 = scmp.lt.s32.totalorder %s3093_s30, %s2901_s21 }
  0x29   : > { %p2898_p10 = pnand %p2896_p6, %p2882_p11  ;;  %p2904_p0 = scmp.lt.s32.totalorder %s2902_s29, %s2895_s1 }
  0x2b   : > { %p2899_p12 = pneg %p2898_p10  ;;  %p2905_p1 = por %p2904_p0, %p2903_p9 }
  0x2d   : > { %p2906_p2 = pnand %p2905_p1, %p2899_p12 }
  0x2f   : > { %2909 = shalt.err (!%p2906_p2)
}
  0x30   : > { %s2947_s22 = smov 64   ;;  %s2948_s23 = smov 4  }
  0x31   : > { %2619 = dma.hbm_to_vmem [thread:$0]  (!%p3095_p8), %s3091_s0, 2048, %s3093_s30, %s3100_s26, %s2947_s22, %s2947_s22, %s2948_s23  }
  0x32   : > { %p563_p11 = scmp.lt.s32.totalorder %s2944_s27, 3  ;;  %p3603_p13 = scmp.ge.s32.totalorder %s2944_s27, 1 }
  0x34   : > { %p564_p3 = pnand %p3603_p13, %p563_p11 }
  0x36   : > { %567 = sbr.rel (%p564_p3) target bundleno = 2950 (0xb86), region = 88 }
  0x3d   : > { %s569_s24 = sand.u32 1, %s2936_s25  }
  0x3e   : > { %s2378_s1 = sshll.u32 %s569_s24, 7  ;;  %s570_s20 = scalar_lea.sflag [#allocation4], %s569_s24 }
  0x3f   : > { %s3132_s21 = scalar_lea.vmem [#allocation3], %s2378_s1 }
  0x40   : > { %3604 = sst [smem:[#allocation10_spill]] %s3132_s21 }
  0x41   : > { %2927 = dma.done.wait (%p3082_p7), %s570_s20, 2048  }
  0x42   : > { %2929 = vsyncadd (%p3082_p7), %s570_s20, 4294965248  ;;  %p649_p9 = scmp.lt.s32.totalorder %s3065_s28, 1  ;;  %s3605_s9 = sld [smem:[#allocation14_spill]] }
  0x43   : > { %p2388_p7 = scmp.ne.s32.totalorder %s3065_s28, 0 }
  0x44   : > { %s3140_s26 = scalar_select %p649_p9, %s3065_s28, 1 }
  0x45   : > { %683 = sbr.rel (%p2388_p7) target bundleno = 78 (0x4e), region = 96  ;;  %s3606_s24 = sld [smem:[#allocation11_spill]] (!%p2388_p7) }
  0x46   : > { %s2516_s30 = sshll.u32 %s3140_s26, 7  ;;  %s2381_s23 = sshll.u32 %s3140_s26, 1 }
  0x47   : > { %s3156_s20 = scalar_lea.vmem %s3573_s10, %s2381_s23  ;;  %s2517_s15 = sshll.u32 %s3140_s26, 6 }
  0x48   : > { %s3150_s19 = scalar_lea.vmem %s3605_s9, %s2516_s30  ;;  %s3162_s18 = scalar_lea.vmem %s3574_s11, %s2517_s15 }
  0x49   : > { %s668_s16 = scalar_lea.vmem %s3575_s12, %s3140_s26  ;;  %s3171_s22 = scalar_lea.vmem %s3576_s13, %s2516_s30 }
  0x4a   : > { %s3176_s23 = scalar_lea.vmem %s3577_s14, %s2516_s30 }
  0x4b   : > { %s3607_s1 = smov (!%p2388_p7), %s3606_s24  ;;  %v684_v0 = vld [vmem:[%s3606_s24] sm:$0xff] (!%p2388_p7) }
  0x4c   : > { %v685_v1 = vld [vmem:[%s3607_s1 + $0x8] sm:$0xff]  ;;  %686 = vst [vmem:[#allocation2] sm:$0xff] %v684_v0 }
  0x4d   : > { %687 = vst [vmem:[#allocation2 + $0x8] sm:$0xff] %v685_v1 }
  0x4e PF: > { %v2674_v5 = vld [vmem:[%s3150_s19 + $0x4] ss:$8 sps:$4 sm:$0xff]   ;;  %v2676_v6 = vld [vmem:[%s3150_s19] ss:$8 sps:$4 sm:$0xff]   ;;  %v2677_v7 = vld [vmem:[%s3150_s19 + $0x14] ss:$8 sps:$4 sm:$0xff]   ;;  %s3608_s27 = scalar_lea.vmem %s3571_s8, %s3140_s26 }
  0x4f   : > { %901 = vmatprep.subr.bf16.mxu0 %v2674_v5  ;;  %v2679_v9 = vld [vmem:[%s3150_s19 + $0x10] ss:$8 sps:$4 sm:$0xff]   ;;  %v2680_v10 = vld [vmem:[%s3150_s19 + $0x24] ss:$8 sps:$4 sm:$0xff]   ;;  %v2682_v11 = vld [vmem:[%s3150_s19 + $0x20] ss:$8 sps:$4 sm:$0xff]   ;;  %v811_v5 = vlaneseq }
  0x50   : > { %902 = vmatpush1.bf16.msra.mxu0 %v2676_v6  ;;  %v2683_v12 = vld [vmem:[%s3150_s19 + $0x34] ss:$8 sps:$4 sm:$0xff]   ;;  %v2685_v13 = vld [vmem:[%s3150_s19 + $0x30] ss:$8 sps:$4 sm:$0xff]   ;;  %v2686_v14 = vld [vmem:[%s3150_s19 + $0x44] ss:$8 sps:$4 sm:$0xff]  }
  0x51   : > { %903 = vmatprep.subr.bf16.mxu0 %v2677_v7  ;;  %v2688_v15 = vld [vmem:[%s3150_s19 + $0x40] ss:$8 sps:$4 sm:$0xff]   ;;  %v2689_v16 = vld [vmem:[%s3150_s19 + $0x54] ss:$8 sps:$4 sm:$0xff]   ;;  %v2691_v17 = vld [vmem:[%s3150_s19 + $0x50] ss:$8 sps:$4 sm:$0xff]  }
  0x52   : > { %v2692_v18 = vld [vmem:[%s3150_s19 + $0x64] ss:$8 sps:$4 sm:$0xff]   ;;  %v2949_v19 = vmov 0   ;;  %v2694_v20 = vld [vmem:[%s3150_s19 + $0x60] ss:$8 sps:$4 sm:$0xff]   ;;  %v812_v6 = vshrl.u32 %v811_v5, 7 }
  0x53   : > { %933 = vmatprep.mubr.bf16.mxu0 %v2949_v19  ;;  %2662 = vset.pattern.permute.xlu1 %v2949_v19  ;;  %v2695_v21 = vld [vmem:[%s3150_s19 + $0x74] ss:$8 sps:$4 sm:$0xff]   ;;  %v2697_v22 = vld [vmem:[%s3150_s19 + $0x70] ss:$8 sps:$4 sm:$0xff]   ;;  %v2698_v23 = vld [vmem:[%s3570_s7 + $0x4] ss:$8 sps:$4 sm:$0xff]  }
  0x54   : > { %v3187_v3 = vld [vmem:[#allocation2 + $0x8] sm:$0xff]  ;;  %904 = vmatpush1.bf16.msra.mxu0 %v2679_v9  ;;  %2663 = vset.pattern.permute.xlu0 %v2949_v19  ;;  %v2701_v25 = vld [vmem:[%s3570_s7 + $0x14] ss:$8 sps:$4 sm:$0xff]   ;;  %v2703_v26 = vld [vmem:[%s3570_s7 + $0x10] ss:$8 sps:$4 sm:$0xff]   ;;  %v813_v7 = vsub.s32 0, %v812_v6 }
  0x55   : > { %v3185_v2 = vld [vmem:[#allocation2] sm:$0xff]  ;;  %v769_v8 = vmul.f32 %v3187_v3, %v3187_v3  ;;  %905 = vmatprep.subr.bf16.mxu0 %v2680_v10  ;;  %1138 = vmatprep.subr.bf16.mxu1 %v2698_v23  ;;  %v2707_v29 = vld [vmem:[%s3570_s7 + $0x34] ss:$8 sps:$4 sm:$0xff]   ;;  %v2709_v30 = vld [vmem:[%s3570_s7 + $0x30] ss:$8 sps:$4 sm:$0xff]   ;;  %v817_v9 = vsub.s32 1, %v812_v6 }
  0x56   : > { %v768_v4 = vmul.f32 %v3185_v2, %v3185_v2  ;;  %v2700_v24 = vld [vmem:[%s3570_s7] ss:$8 sps:$4 sm:$0xff]   ;;  %v2704_v27 = vld [vmem:[%s3570_s7 + $0x24] ss:$8 sps:$4 sm:$0xff]   ;;  %v2713_v33 = vld [vmem:[%s3570_s7 + $0x54] ss:$8 sps:$4 sm:$0xff]  }
  0x57   : > { %1139 = vmatpush1.bf16.msra.mxu1 %v2700_v24  ;;  %v2706_v28 = vld [vmem:[%s3570_s7 + $0x20] ss:$8 sps:$4 sm:$0xff]   ;;  %v2710_v31 = vld [vmem:[%s3570_s7 + $0x44] ss:$8 sps:$4 sm:$0xff]   ;;  %v2715_v34 = vld [vmem:[%s3570_s7 + $0x50] ss:$8 sps:$4 sm:$0xff]  }
  0x58   : > { %770 = vadd.xlane.f32.xlu0 %v768_v4  ;;  %906 = vmatpush1.bf16.msra.mxu0 %v2682_v11  ;;  %v2712_v32 = vld [vmem:[%s3570_s7 + $0x40] ss:$8 sps:$4 sm:$0xff]   ;;  %v2716_v35 = vld [vmem:[%s3570_s7 + $0x64] ss:$8 sps:$4 sm:$0xff]   ;;  %v2719_v37 = vld [vmem:[%s3570_s7 + $0x74] ss:$8 sps:$4 sm:$0xff]  }
  0x59   : > { %907 = vmatprep.subr.bf16.mxu0 %v2683_v12  ;;  %1140 = vmatprep.subr.bf16.mxu1 %v2701_v25  ;;  %v2718_v36 = vld [vmem:[%s3570_s7 + $0x60] ss:$8 sps:$4 sm:$0xff]   ;;  %v2721_v38 = vld [vmem:[%s3570_s7 + $0x70] ss:$8 sps:$4 sm:$0xff]   ;;  %v2722_v39 = vld [vmem:[%s3570_s7 + $0x84] ss:$8 sps:$4 sm:$0xff]  }
  0x5a   : > { %v2724_v40 = vld [vmem:[%s3570_s7 + $0x80] ss:$8 sps:$4 sm:$0xff]   ;;  %v2725_v41 = vld [vmem:[%s3570_s7 + $0x94] ss:$8 sps:$4 sm:$0xff]   ;;  %v2727_v42 = vld [vmem:[%s3570_s7 + $0x90] ss:$8 sps:$4 sm:$0xff]  }
  0x5b   : > { %1141 = vmatpush1.bf16.msra.mxu1 %v2703_v26  ;;  %v2728_v43 = vld [vmem:[%s3570_s7 + $0xa4] ss:$8 sps:$4 sm:$0xff]   ;;  %v2730_v44 = vld [vmem:[%s3570_s7 + $0xa0] ss:$8 sps:$4 sm:$0xff]   ;;  %v2731_v45 = vld [vmem:[%s3570_s7 + $0xb4] ss:$8 sps:$4 sm:$0xff]  }
  0x5c   : > { %772 = vadd.xlane.f32.xlu0 %v769_v8  ;;  %908 = vmatpush1.bf16.msra.mxu0 %v2685_v13  ;;  %v2733_v46 = vld [vmem:[%s3570_s7 + $0xb0] ss:$8 sps:$4 sm:$0xff]   ;;  %v2734_v47 = vld [vmem:[%s3570_s7 + $0xc4] ss:$8 sps:$4 sm:$0xff]   ;;  %v2736_v48 = vld [vmem:[%s3570_s7 + $0xc0] ss:$8 sps:$4 sm:$0xff]  }
  0x5d   : > { %909 = vmatprep.subr.bf16.mxu0 %v2686_v14  ;;  %1142 = vmatprep.subr.bf16.mxu1 %v2704_v27  ;;  %v2737_v49 = vld [vmem:[%s3570_s7 + $0xd4] ss:$8 sps:$4 sm:$0xff]   ;;  %v2739_v50 = vld [vmem:[%s3570_s7 + $0xd0] ss:$8 sps:$4 sm:$0xff]   ;;  %v2391_v60 = vld [vmem:[%s3608_s27] ss:$0 sm:$0xff] }
  0x5e   : > { %v2740_v1 = vld [vmem:[%s3570_s7 + $0xe4] ss:$8 sps:$4 sm:$0xff]   ;;  %v2743_v4 = vld [vmem:[%s3570_s7 + $0xf4] ss:$8 sps:$4 sm:$0xff]   ;;  %v809_v8 = vld [vmem:[%s3156_s20] sm:$0x3] }
  0x5f   : > { %1143 = vmatpush1.bf16.msra.mxu1 %v2706_v28  ;;  %v814_v10 = vrot.slane %v809_v8, %v813_v7  ;;  %v818_v12 = vrot.slane %v809_v8, %v817_v9  ;;  %v1181_v23 = vld [vmem:[%s3568_s5] sm:$0xff]  ;;  %s3609_s4 = sld [smem:[#allocation12_spill]]  ;;  %v1182_v26 = vld [vmem:[%s3568_s5 + $0x8] sm:$0xff]  ;;  %v1183_v28 = vld [vmem:[%s3568_s5 + $0x10] sm:$0xff]  ;;  %vm1206_vm0 = vcmask 261120   ;;  %s2950_s9 = smov 96  }
  0x60   : > { %910 = vmatpush1.bf16.msra.mxu0 %v2688_v15  ;;  %1144 = vmatprep.subr.bf16.mxu1 %v2707_v29  ;;  %v1189_v24 = vld [vmem:[%s3569_s6] sm:$0xff]  ;;  %v1190_v27 = vld [vmem:[%s3569_s6 + $0x8] sm:$0xff]  ;;  %s3610_s20 = sld [smem:[#allocation13_spill]]  ;;  %v2951_v6 = vmov -1e+30   ;;  %vm1265_vm12 = vcmask 130048  }
  0x61   : > { %911 = vmatprep.subr.bf16.mxu0 %v2689_v16  ;;  %s2952_s24 = smov 64   ;;  %vm2955_vm14 = vmmov 0   ;;  %vm1601_vm15 = vcmask 523264   ;;  %p2511_p8 = scmp.ne.s32.totalorder %s3065_s28, 1 }
  0x62   : > { %s3612_s27 = sld [smem:[#allocation16_spill]] (!%p2511_p8)  ;;  %s3613_s21 = sld [smem:[#allocation17_spill]] (!%p2511_p8) }
  0x63   : > { %1145 = vmatpush1.bf16.msra.mxu1 %v2709_v30  ;;  %v1191_v30 = vld [vmem:[%s3569_s6 + $0x10] sm:$0xff] }
  0x64   : > { %912 = vmatpush1.bf16.msra.mxu0 %v2691_v17  ;;  %1146 = vmatprep.subr.bf16.mxu1 %v2710_v31 }
  0x65   : > { %913 = vmatprep.subr.bf16.mxu0 %v2692_v18  ;;  %v692_v25 = vld [vmem:[%s3609_s4 + $0x8] sm:$0xff] }
  0x67   : > { %1147 = vmatpush1.bf16.msra.mxu1 %v2712_v32  ;;  %v1184_v32 = vld [vmem:[%s3568_s5 + $0x18] sm:$0xff] }
  0x68   : > { %914 = vmatpush1.bf16.msra.mxu0 %v2694_v20  ;;  %1148 = vmatprep.subr.bf16.mxu1 %v2713_v33 }
  0x69   : > { %915 = vmatprep.subr.bf16.mxu0 %v2695_v21 }
  0x6b   : > { %1149 = vmatpush1.bf16.msra.mxu1 %v2715_v34 }
  0x6c   : > { %916 = vmatpush1.bf16.msra.mxu0 %v2697_v22  ;;  %1150 = vmatprep.subr.bf16.mxu1 %v2716_v35  ;;  %v1192_v35 = vld [vmem:[%s3569_s6 + $0x18] sm:$0xff] }
  0x6f   : > { %1151 = vmatpush1.bf16.msra.mxu1 %v2718_v36 }
  0x70   : > { %1152 = vmatprep.subr.bf16.mxu1 %v2719_v37 }
  0x72   : > { %708 = vperm.xlu0 %2663, %v692_v25  }
  0x73   : > { %1153 = vmatpush1.bf16.msra.mxu1 %v2721_v38 }
  0x74   : > { %1154 = vmatprep.subr.bf16.mxu1 %v2722_v39 }
  0x77   : > { %1155 = vmatpush1.bf16.msra.mxu1 %v2724_v40 }
  0x78   : > { %1156 = vmatprep.subr.bf16.mxu1 %v2725_v41 }
  0x7b   : > { %1157 = vmatpush1.bf16.msra.mxu1 %v2727_v42 }
  0x7c   : > { %1158 = vmatprep.subr.bf16.mxu1 %v2728_v43 }
  0x7f   : > { %1159 = vmatpush1.bf16.msra.mxu1 %v2730_v44 }
  0x80   : > { %1160 = vmatprep.subr.bf16.mxu1 %v2731_v45 }
  0x83   : > { %1161 = vmatpush1.bf16.msra.mxu1 %v2733_v46 }
  0x84   : > { %1162 = vmatprep.subr.bf16.mxu1 %v2734_v47 }
  0x87   : > { %1163 = vmatpush1.bf16.msra.mxu1 %v2736_v48 }
  0x88   : > { %1164 = vmatprep.subr.bf16.mxu1 %v2737_v49 }
  0x8b   : > { %1165 = vmatpush1.bf16.msra.mxu1 %v2739_v50 }
  0x8c   : > { %1166 = vmatprep.subr.bf16.mxu1 %v2740_v1  ;;  %v2390_v1 = vld [vmem:[%s3610_s20] ss:$0 sm:$0xff] }
  0xe5   : > { %v771_v51 = vpop.xlane.xlu0 %770 }
  0xe6   : > { %v775_v52 = vmul.f32 0.0078125, %v771_v51  ;;  %v691_v51 = vld [vmem:[%s3609_s4] sm:$0xff] }
  0xe8   : > { %v777_v53 = vadd.f32 1e-05, %v775_v52  ;;  %v726_v52 = vld [vmem:[%s3565_s2] sm:$0xff] }
  0xe9   : > { %v773_v54 = vpop.xlane.xlu0 %772 }
  0xea   : > { %2818 = vrsqrt.f32 %v777_v53  ;;  %v776_v55 = vmul.f32 0.0078125, %v773_v54  ;;  %v727_v53 = vld [vmem:[%s3565_s2 + $0x8] sm:$0xff]  ;;  %v693_v54 = vld [vmem:[%s3609_s4 + $0x10] sm:$0xff] }
  0xec   : > { %v778_v56 = vadd.f32 1e-05, %v776_v55  ;;  %v694_v55 = vld [vmem:[%s3609_s4 + $0x18] sm:$0xff] }
  0xee   : > { %2820 = vrsqrt.f32 %v778_v56  ;;  %v728_v56 = vld [vmem:[%s3565_s2 + $0x10] sm:$0xff] }
  0xf4   : > { %v2819_v57 = vpop.eup %2818 }
  0xf5   : > { %v781_v58 = vmul.f32 %v2819_v57, %v3185_v2  ;;  %v2742_v2 = vld [vmem:[%s3570_s7 + $0xe0] ss:$8 sps:$4 sm:$0xff]   ;;  %v729_v57 = vld [vmem:[%s3565_s2 + $0x18] sm:$0xff] }
  0xf6   : > { %1167 = vmatpush1.bf16.msra.mxu1 %v2742_v2 }
  0xf7   : > { %v790_v62 = vmul.f32 %v2391_v60, %v781_v58  ;;  %1168 = vmatprep.subr.bf16.mxu1 %v2743_v4  ;;  %v709_v4 = vpop.permute.xlu0 %708 }
  0xf8   : > { %v2821_v59 = vpop.eup %2820 }
  0xf9   : > { %v782_v61 = vmul.f32 %v2821_v59, %v3187_v3  ;;  %v2745_v3 = vld [vmem:[%s3570_s7 + $0xf0] ss:$8 sps:$4 sm:$0xff]  }
  0xfa   : > { %1169 = vmatpush1.bf16.msra.mxu1 %v2745_v3 }
  0xfb   : > { %v791_v63 = vmul.f32 %v2391_v60, %v782_v61 }
  0xfd   : > { %v792_v0 = vpack.c.bf16 %v791_v63, %v790_v62 }
  0xff   : > { %934 = vmatmul.mubr.bf16.vlgmr.msra.gmra.mrb[0].mxu0 %v792_v0  ;;  %v2389_v0 = vld [vmem:[%s3566_s3] ss:$0 sm:$0xff] }
 0x100   : > { %vm722_vm4 = vcmp.le.f32.partialorder %v2389_v0, %v709_v4 }
 0x1d2   : > { %v935_v11 = vpop.f32.mrb[0].mxu0 }
 0x1d3   : > { %v937_v13 = vpop.f32.mrb[1].mxu0  ;;  %v936_v15 = vadd.f32 %v935_v11, %v814_v10 }
 0x1d4   : > { %v939_v14 = vpop.f32.mrb[2].mxu0  ;;  %v938_v18 = vadd.f32 %v937_v13, %v818_v12 }
 0x1d5   : > { %v940_v16 = vadd.f32 %v939_v14, %v814_v10  ;;  %v941_v17 = vpop.f32.mrb[3].mxu0  ;;  %v1185_v31 = vmul.f32 %v1181_v23, %v936_v15 }
 0x1d6   : > { %v942_v20 = vadd.f32 %v941_v17, %v818_v12  ;;  %v1186_v36 = vmul.f32 %v1182_v26, %v938_v18 }
 0x1d7   : > { %v944_v21 = vpack.c.bf16 %v940_v16, %v936_v15  ;;  %v1187_v39 = vmul.f32 %v1183_v28, %v940_v16 }
 0x1d8   : > { %v945_v22 = vpack.c.bf16 %v942_v20, %v938_v18  ;;  %v1188_v43 = vmul.f32 %v1184_v32, %v942_v20 }
 0x1da   : > { %1170 = vmatprep.mubr.bf16.mxu1 %v945_v22 }
 0x1db   : > { %1171 = vmatmul.mubr.bf16.vlgmr.msra.gmra.mrb[0].mxu1 %v944_v21 }
 0x2ae   : > { %v1172_v29 = vpop.f32.mrb[0].mxu1 }
 0x2af   : > { %v1193_v33 = vmul.f32 %v1189_v24, %v1172_v29  ;;  %v1174_v34 = vpop.f32.mrb[1].mxu1 }
 0x2b0   : > { %v1194_v37 = vmul.f32 %v1190_v27, %v1174_v34  ;;  %v1176_v38 = vpop.f32.mrb[2].mxu1 }
 0x2b1   : > { %v1197_v40 = vadd.f32 %v1193_v33, %v1185_v31  ;;  %v1195_v41 = vmul.f32 %v1191_v30, %v1176_v38  ;;  %v1178_v42 = vpop.f32.mrb[3].mxu1 }
 0x2b2   : > { %v1198_v44 = vadd.f32 %v1194_v37, %v1186_v36  ;;  %v1196_v45 = vmul.f32 %v1192_v35, %v1178_v42 }
 0x2b3   : > { %v1199_v46 = vadd.f32 %v1195_v41, %v1187_v39 }
 0x2b4   : > { %v1200_v47 = vadd.f32 %v1196_v45, %v1188_v43 }
 0x2b5   : > { %v3343_v48 = vpack.c.bf16 %v1199_v46, %v1197_v40 }
 0x2b6   : > { %v3345_v49 = vpack.c.bf16 %v1200_v47, %v1198_v44 }
 0x2b7   : > { %1204 = vrot.lane.b32.xlu1 %v3343_v48, %s2950_s9  ;;  %2566 = vmatprep.mubr.msk.bf16.mxu0 %vm1206_vm0, %v3343_v48 }
 0x2b8   : > { %2612 = vmatprep.subr.msk.bf16.mxu0 %vm1206_vm0, %v3345_v49  ;;  %v1214_v50 = vsel %vm1206_vm0, %v3345_v49, 0 }
 0x2b9   : > { %2565 = vmatpush3.bf16.xpose.msra.mxu0 %v1214_v50 }
 0x2bb   : > { %703 = vperm.xlu1 %2662, %v691_v51  }
 0x2bf   : > { %738 = vperm.xlu1 %2662, %v726_v52  }
 0x2c3   : > { %743 = vperm.xlu1 %2662, %v727_v53  }
 0x2c7   : > { %713 = vperm.xlu1 %2662, %v693_v54  }
 0x2cb   : > { %718 = vperm.xlu1 %2662, %v694_v55  }
 0x2cf   : > { %748 = vperm.xlu1 %2662, %v728_v56  }
 0x2d3   : > { %753 = vperm.xlu1 %2662, %v729_v57  }
 0x329   : > { %v1205_v58 = vpop.permute.xlu1 %1204 }
 0x32a   : > { %2567 = vmatmul.mubr.msk.bf16.vlgmr.msra.gmra.mrb[4].mxu0 %vm1206_vm0, %v1205_v58 }
 0x33a   : > { %v704_v59 = vpop.permute.xlu1 %703 }
 0x33b   : > { %vm721_vm1 = vcmp.le.f32.partialorder %v2389_v0, %v704_v59 }
 0x33e   : > { %v739_v60 = vpop.permute.xlu1 %738 }
 0x33f   : > { %vm756_vm2 = vcmp.eq.f32.partialorder %v2390_v1, %v739_v60 }
 0x340   : > { %vm760_vm7 = vmand %vm721_vm1, %vm756_vm2 }
 0x341   : > { %v3383_v7 = vsel %vm760_vm7, 0.0, %v2951_v6 }
 0x342   : > { %v744_v61 = vpop.permute.xlu1 %743 }
 0x343   : > { %vm757_vm3 = vcmp.eq.f32.partialorder %v2390_v1, %v744_v61 }
 0x344   : > { %vm761_vm8 = vmand %vm722_vm4, %vm757_vm3 }
 0x345   : > { %v3386_v12 = vsel %vm761_vm8, 0.0, %v2951_v6 }
 0x346   : > { %v714_v62 = vpop.permute.xlu1 %713 }
 0x347   : > { %vm723_vm5 = vcmp.le.f32.partialorder %v2389_v0, %v714_v62 }
 0x34a   : > { %v719_v63 = vpop.permute.xlu1 %718 }
 0x34b   : > { %vm724_vm10 = vcmp.le.f32.partialorder %v2389_v0, %v719_v63 }
 0x34e   : > { %v749_v2 = vpop.permute.xlu1 %748 }
 0x34f   : > { %vm758_vm6 = vcmp.eq.f32.partialorder %v2390_v1, %v749_v2 }
 0x350   : > { %vm762_vm9 = vmand %vm723_vm5, %vm758_vm6 }
 0x351   : > { %v766_v11 = vsel %vm762_vm9, 0.0, %v2951_v6 }
 0x352   : > { %v754_v3 = vpop.permute.xlu1 %753 }
 0x353   : > { %vm759_vm11 = vcmp.eq.f32.partialorder %v2390_v1, %v754_v3 }
 0x354   : > { %vm763_vm13 = vmand %vm724_vm10, %vm759_vm11 }
 0x355   : > { %v767_v18 = vsel %vm763_vm13, 0.0, %v2951_v6 }
 0x3fd   : > { %v2568_v5 = vpop.f32.mrb[4].mxu0 }
 0x3fe   : > { %v1250_v8 = vpop.f32.mrb[5].mxu0  ;;  %v1259_v14 = vadd.f32 %v2568_v5, %v766_v11 }
 0x3ff   : > { %v1251_v9 = vadd.f32 %v1250_v8, %v3383_v7  ;;  %v2569_v10 = vpop.f32.mrb[6].mxu0 }
 0x400   : > { %v1253_v13 = vpop.f32.mrb[7].mxu0  ;;  %v1262_v20 = vadd.f32 %v2569_v10, %v767_v18  ;;  %v1272_v21 = vsel %vm1265_vm12, %v1259_v14, -inf }
 0x401   : > { %v1254_v15 = vadd.f32 %v1253_v13, %v3386_v12  ;;  %v1266_v16 = vsel %vm1265_vm12, %v1251_v9, -inf }
 0x402   : > { %1267 = vmax.xlane.f32.xlu1 %v1266_v16  ;;  %v1275_v22 = vsel %vm1265_vm12, %v1262_v20, -inf }
 0x403   : > { %v1269_v17 = vsel %vm1265_vm12, %v1254_v15, -inf }
 0x404   : > { %1270 = vmax.xlane.f32.xlu0 %v1269_v17 }
 0x406   : > { %1273 = vmax.xlane.f32.xlu1 %v1272_v21 }
 0x40a   : > { %1276 = vmax.xlane.f32.xlu1 %v1275_v22 }
 0x41a   : > { %1394 = vrot.lane.b32.xlu0 %v3345_v49, %s2950_s9  ;;  %s2953_s9 = smov 32  }
 0x41b   : > { %1305 = vrot.lane.b32.xlu1 %v3345_v49, %s2952_s24 }
 0x41f   : > { %1390 = vrot.lane.b32.xlu1 %v3343_v48, %s2952_s24 }
 0x423   : > { %1392 = vrot.lane.b32.xlu1 %v1205_v58, %s2952_s24 }
 0x48f   : > { %v1268_v23 = vpop.xlane.xlu1 %1267 }
 0x490   : > { %v1278_v24 = vsub.f32 %v1251_v9, %v1268_v23 }
 0x491   : > { %v1271_v25 = vpop.xlane.xlu0 %1270 }
 0x492   : > { %v1282_v26 = vmul.f32 1.442695, %v1278_v24  ;;  %v1279_v27 = vsub.f32 %v1254_v15, %v1271_v25 }
 0x493   : > { %v1274_v28 = vpop.xlane.xlu1 %1273 }
 0x494   : > { %v1284_v29 = vmul.f32 1.442695, %v1279_v27  ;;  %v1280_v30 = vsub.f32 %v1259_v14, %v1274_v28  ;;  %2822 = vpow2.f32 %v1282_v26  ;;  %v2746_v26 = vld [vmem:[%s3162_s18 + $0x20] sm:$0xff]   ;;  %v2954_v27 = vmov 0.0   ;;  %v2747_v28 = vld [vmem:[%s3162_s18 + $0x28] sm:$0xff]  }
 0x495   : > { %v1395_v36 = vpop.permute.xlu0 %1394  ;;  %2588 = vmatprep.subr.bf16.mxu1 %v2954_v27  ;;  %2596 = vmatprep.mubr.msk.bf16.mxu1 %vm2955_vm14, %v2954_v27 }
 0x496   : > { %2824 = vpow2.f32 %v1284_v29  ;;  %v1286_v31 = vmul.f32 1.442695, %v1280_v30  ;;  %v1403_v43 = vsel %vm1206_vm0, %v1395_v36, 0  ;;  %2589 = vmatpush3.bf16.msra.mxu1 %v2746_v26  ;;  %v2748_v29 = vld [vmem:[%s3162_s18 + $0x30] sm:$0xff]  }
 0x497   : > { %v1277_v32 = vpop.xlane.xlu1 %1276  ;;  %2590 = vmatprep.subr.bf16.mxu1 %v2954_v27 }
 0x498   : > { %v1281_v33 = vsub.f32 %v1262_v20, %v1277_v32  ;;  %2826 = vpow2.f32 %v1286_v31 }
 0x49a   : > { %v1288_v34 = vmul.f32 1.442695, %v1281_v33  ;;  %2591 = vmatpush3.bf16.msra.mxu1 %v2747_v28 }
 0x49b   : > { %v1306_v35 = vpop.permute.xlu1 %1305  ;;  %2592 = vmatprep.subr.bf16.mxu1 %v2954_v27 }
 0x49c   : > { %2828 = vpow2.f32 %v1288_v34  ;;  %2570 = vmatprep.subr.bf16.mxu0 %v1306_v35 }
 0x49d   : > { %2571 = vmatpush3.bf16.msra.mxu0 %v1306_v35 }
 0x49e   : > { %2613 = vmatprep.subr.msk.bf16.mxu0 %vm1206_vm0, %v1395_v36  ;;  %v2823_v37 = vpop.eup %2822  ;;  %2593 = vmatpush3.bf16.msra.mxu1 %v2748_v29 }
 0x49f   : > { %v1391_v44 = vpop.permute.xlu1 %1390  ;;  %v1290_v63 = vsel %vm1265_vm12, %v2823_v37, 0.0  ;;  %2594 = vmatprep.subr.bf16.mxu1 %v2954_v27 }
 0x4a0   : > { %v3398_v38 = vpop.eup %2824 }
 0x4a1   : > { %v1302_v39 = vpack.c.bf16 %v3398_v38, %v2823_v37  ;;  %v1293_v24 = vsel %vm1265_vm12, %v3398_v38, 0.0 }
 0x4a2   : > { %v3402_v40 = vpop.eup %2826 }
 0x4a3   : > { %2572 = vmatprep.mubr.msk.bf16.mxu0 %vm1265_vm12, %v1302_v39  ;;  %v1393_v45 = vpop.permute.xlu1 %1392  ;;  %v1296_v21 = vsel %vm1265_vm12, %v3402_v40, 0.0  ;;  %v2749_v39 = vld [vmem:[%s3162_s18 + $0x38] sm:$0xff]  }
 0x4a4   : > { %2595 = vmatpush3.bf16.msra.mxu1 %v2749_v39 }
 0x4a5   : > { %2600 = vmatprep.subr.bf16.mxu1 %v2954_v27 }
 0x4a6   : > { %v3404_v41 = vpop.eup %2828 }
 0x4a7   : > { %v1303_v42 = vpack.c.bf16 %v3404_v41, %v3402_v40  ;;  %v1299_v22 = vsel %vm1265_vm12, %v3404_v41, 0.0 }
 0x4a9   : > { %2573 = vmatmul.mubr.msk.bf16.vlgmr.msra.gmra.mrb[8].mxu0 %vm1265_vm12, %v1303_v42 }
 0x4aa   : > { %2577 = vmatpush3.bf16.xpose.msra.mxu0 %v1403_v43  ;;  %2578 = vmatprep.mubr.msk.bf16.mxu0 %vm1206_vm0, %v1391_v44 }
 0x4b1   : > { %2579 = vmatmul.mubr.msk.bf16.vlgmr.msra.gmra.mrb[12].mxu0 %vm1206_vm0, %v1393_v45 }
 0x57c   : > { %v3412_v46 = vpop.f32.mrb[8].mxu0 }
 0x57d   : > { %v3414_v47 = vpop.f32.mrb[9].mxu0 }
 0x57e   : > { %v3416_v48 = vpop.f32.mrb[10].mxu0 }
 0x57f   : > { %v3418_v50 = vpop.f32.mrb[11].mxu0 }
 0x584   : > { %v2580_v51 = vpop.f32.mrb[12].mxu0 }
 0x585   : > { %v1448_v52 = vadd.f32 %v2580_v51, %v766_v11  ;;  %v1439_v53 = vpop.f32.mrb[13].mxu0 }
 0x586   : > { %v1440_v54 = vadd.f32 %v1439_v53, %v3383_v7  ;;  %v2581_v55 = vpop.f32.mrb[14].mxu0 }
 0x587   : > { %v1442_v56 = vpop.f32.mrb[15].mxu0  ;;  %v1460_v57 = vsel %vm1265_vm12, %v1448_v52, -inf  ;;  %v1451_v58 = vadd.f32 %v2581_v55, %v767_v18 }
 0x588   : > { %v1443_v59 = vadd.f32 %v1442_v56, %v3386_v12  ;;  %1461 = vmax.xlane.f32.xlu0 %v1460_v57  ;;  %v1454_v60 = vsel %vm1265_vm12, %v1440_v54, -inf }
 0x589   : > { %1455 = vmax.xlane.f32.xlu1 %v1454_v60  ;;  %v1463_v62 = vsel %vm1265_vm12, %v1451_v58, -inf }
 0x58a   : > { %v1457_v61 = vsel %vm1265_vm12, %v1443_v59, -inf }
 0x58c   : > { %1458 = vmax.xlane.f32.xlu0 %v1457_v61 }
 0x58d   : > { %1464 = vmax.xlane.f32.xlu1 %v1463_v62 }
 0x5a2   : > { %1492 = vrot.lane.b32.xlu0 %v3345_v49, %s2953_s9 }
 0x5c1   : > { %1291 = vadd.xlane.f32.xlu0 %v1290_v63 }
 0x615   : > { %v1462_v0 = vpop.xlane.xlu0 %1461 }
 0x616   : > { %v1468_v1 = vsub.f32 %v1448_v52, %v1462_v0  ;;  %v1456_v2 = vpop.xlane.xlu1 %1455 }
 0x617   : > { %v1466_v4 = vsub.f32 %v1440_v54, %v1456_v2 }
 0x618   : > { %v1474_v3 = vmul.f32 1.442695, %v1468_v1 }
 0x619   : > { %v1470_v5 = vmul.f32 1.442695, %v1466_v4  ;;  %v1459_v6 = vpop.xlane.xlu0 %1458  ;;  %v2750_v4 = vld [vmem:[%s3162_s18] sm:$0xff]  }
 0x61a   : > { %2830 = vpow2.f32 %v1474_v3  ;;  %v1467_v7 = vsub.f32 %v1443_v59, %v1459_v6  ;;  %v1465_v8 = vpop.xlane.xlu1 %1464 }
 0x61b   : > { %v1469_v9 = vsub.f32 %v1451_v58, %v1465_v8  ;;  %2832 = vpow2.f32 %v1470_v5 }
 0x61c   : > { %v1472_v10 = vmul.f32 1.442695, %v1467_v7 }
 0x61d   : > { %v1476_v11 = vmul.f32 1.442695, %v1469_v9  ;;  %v1493_v12 = vpop.permute.xlu0 %1492 }
 0x61e   : > { %2834 = vpow2.f32 %v1472_v10  ;;  %2582 = vmatprep.subr.bf16.mxu0 %v1493_v12 }
 0x61f   : > { %2836 = vpow2.f32 %v1476_v11  ;;  %2583 = vmatpush3.bf16.msra.mxu0 %v1493_v12  ;;  %v2751_v12 = vld [vmem:[%s3162_s18 + $0x8] sm:$0xff]  }
 0x624   : > { %v2831_v49 = vpop.eup %2830 }
 0x625   : > { %v1484_v13 = vsel %vm1265_vm12, %v2831_v49, 0.0  ;;  %v2833_v14 = vpop.eup %2832 }
 0x626   : > { %1485 = vadd.xlane.f32.xlu1 %v1484_v13  ;;  %v1478_v23 = vsel %vm1265_vm12, %v2833_v14, 0.0  ;;  %v2754_v13 = vld [vmem:[%s3171_s22] ss:$8 sps:$4 sm:$0xff]  }
 0x628   : > { %v2835_v15 = vpop.eup %2834 }
 0x629   : > { %v2837_v16 = vpop.eup %2836  ;;  %v1490_v17 = vpack.c.bf16 %v2835_v15, %v2833_v14  ;;  %v1481_v25 = vsel %vm1265_vm12, %v2835_v15, 0.0  ;;  %v2756_v14 = vld [vmem:[%s3171_s22 + $0x4] ss:$8 sps:$4 sm:$0xff]   ;;  %v2757_v15 = vld [vmem:[%s3176_s23] ss:$8 sps:$4 sm:$0xff]  }
 0x62a   : > { %v1487_v18 = vsel %vm1265_vm12, %v2837_v16, 0.0  ;;  %v1491_v20 = vpack.c.bf16 %v2837_v16, %v2831_v49  ;;  %v2753_v49 = vld [vmem:[%s3162_s18 + $0x18] sm:$0xff]   ;;  %v2759_v16 = vld [vmem:[%s3176_s23 + $0x4] ss:$8 sps:$4 sm:$0xff]   ;;  %1836 = vmatprep.subr.bf16.mxu0 %v2756_v14 }
 0x62b   : > { %2584 = vmatprep.mubr.msk.bf16.mxu0 %vm1265_vm12, %v1490_v17  ;;  %1488 = vadd.xlane.f32.xlu1 %v1487_v18  ;;  %v2762_v17 = vld [vmem:[%s3171_s22 + $0x14] ss:$8 sps:$4 sm:$0xff]  }
 0x62c   : > { %2585 = vmatmul.mubr.msk.bf16.vlgmr.msra.gmra.mrb[16].mxu0 %vm1265_vm12, %v1491_v20  ;;  %v2765_v18 = vld [vmem:[%s3176_s23 + $0x14] ss:$8 sps:$4 sm:$0xff]   ;;  %v2760_v20 = vld [vmem:[%s3171_s22 + $0x10] ss:$8 sps:$4 sm:$0xff]  }
 0x62d   : > { %1868 = vmatprep.mubr.bf16.mxu0 %v2949_v19  ;;  %1837 = vmatpush1.bf16.msra.mxu0 %v2754_v13 }
 0x62e   : > { %1838 = vmatprep.subr.bf16.mxu0 %v2762_v17 }
 0x62f   : > { %1297 = vadd.xlane.f32.xlu1 %v1296_v21  ;;  %v2763_v21 = vld [vmem:[%s3176_s23 + $0x10] ss:$8 sps:$4 sm:$0xff]  }
 0x631   : > { %1839 = vmatpush1.bf16.msra.mxu0 %v2760_v20 }
 0x633   : > { %1300 = vadd.xlane.f32.xlu1 %v1299_v22  ;;  %v2768_v22 = vld [vmem:[%s3171_s22 + $0x24] ss:$8 sps:$4 sm:$0xff]  }
 0x634   : > { %1840 = vmatprep.subr.bf16.mxu0 %v2768_v22 }
 0x637   : > { %1479 = vadd.xlane.f32.xlu1 %v1478_v23  ;;  %v2771_v23 = vld [vmem:[%s3176_s23 + $0x24] ss:$8 sps:$4 sm:$0xff]  }
 0x63b   : > { %1294 = vadd.xlane.f32.xlu1 %v1293_v24  ;;  %v2769_v24 = vld [vmem:[%s3176_s23 + $0x20] ss:$8 sps:$4 sm:$0xff]  }
 0x63f   : > { %1482 = vadd.xlane.f32.xlu1 %v1481_v25 }
 0x64e   : > { %v1292_v55 = vpop.xlane.xlu0 %1291 }
 0x6b3   : > { %v1486_v30 = vpop.xlane.xlu1 %1485 }
 0x6b8   : > { %v1489_v31 = vpop.xlane.xlu1 %1488 }
 0x6bc   : > { %v1298_v32 = vpop.xlane.xlu1 %1297 }
 0x6bd   : > { %2838 = vrcp.f32 %v1298_v32 }
 0x6c0   : > { %v1301_v33 = vpop.xlane.xlu1 %1300 }
 0x6c1   : > { %2840 = vrcp.f32 %v1301_v33  ;;  %v2874_v33 = vld [vmem:[#allocation2] sm:$0xff] }
 0x6c2   : > { %2842 = vrcp.f32 %v1486_v30 }
 0x6c3   : > { %2844 = vrcp.f32 %v1489_v31 }
 0x6c4   : > { %v1480_v52 = vpop.xlane.xlu1 %1479 }
 0x6c5   : > { %2846 = vrcp.f32 %v1480_v52  ;;  %v2786_v52 = vld [vmem:[%s3171_s22 + $0x54] ss:$8 sps:$4 sm:$0xff]  }
 0x6c7   : > { %v2839_v34 = vpop.eup %2838 }
 0x6c8   : > { %v1369_v36 = vmul.f32 %v2839_v34, %v3412_v46  ;;  %v1295_v53 = vpop.xlane.xlu1 %1294 }
 0x6cb   : > { %v2841_v35 = vpop.eup %2840 }
 0x6cc   : > { %v1370_v37 = vmul.f32 %v2841_v35, %v3416_v48  ;;  %v2843_v41 = vpop.eup %2842  ;;  %v1483_v54 = vpop.xlane.xlu1 %1482 }
 0x6cd   : > { %v2845_v43 = vpop.eup %2844  ;;  %2848 = vrcp.f32 %v1483_v54  ;;  %v2784_v54 = vld [vmem:[%s3171_s22 + $0x50] ss:$8 sps:$4 sm:$0xff]  }
 0x6ce   : > { %v2669_v38 = vpack.i.bf16 %v1370_v37, %v1369_v36  ;;  %2850 = vrcp.f32 %v1292_v55  ;;  %v2875_v37 = vld [vmem:[#allocation2 + $0x8] sm:$0xff]  ;;  %v2787_v55 = vld [vmem:[%s3176_s23 + $0x50] ss:$8 sps:$4 sm:$0xff]  }
 0x6cf   : > { %2852 = vrcp.f32 %v1295_v53  ;;  %v2847_v56 = vpop.eup %2846  ;;  %v2789_v53 = vld [vmem:[%s3176_s23 + $0x54] ss:$8 sps:$4 sm:$0xff]  }
 0x6d7   : > { %v2849_v57 = vpop.eup %2848 }
 0x6d8   : > { %v2851_v59 = vpop.eup %2850 }
 0x6d9   : > { %v2853_v0 = vpop.eup %2852  ;;  %v1367_v6 = vmul.f32 %v2851_v59, %v3414_v47  ;;  %v2793_v59 = vld [vmem:[%s3176_s23 + $0x60] ss:$8 sps:$4 sm:$0xff]  }
 0x6da   : > { %v1368_v7 = vmul.f32 %v2853_v0, %v3418_v50  ;;  %v2752_v50 = vld [vmem:[%s3162_s18 + $0x10] sm:$0xff]   ;;  %s3611_s18 = sld [smem:[#allocation10_spill]] }
 0x6e0   : > { %v2804_v13 = vld [vmem:[%s3611_s18 + $0x48] sm:$0xff]   ;;  %v2808_v17 = vld [vmem:[%s3611_s18 + $0x58] sm:$0xff]   ;;  %v2810_v20 = vld [vmem:[%s3611_s18 + $0x60] sm:$0xff]  }
 0x6e1   : > { %v2805_v14 = vld [vmem:[%s3611_s18 + $0x8] sm:$0xff]  }
 0x6e2   : > { %v2812_v22 = vld [vmem:[%s3611_s18 + $0x68] sm:$0xff]  }
 0x6ff   : > { %v2586_v40 = vpop.f32.mrb[16].mxu0 }
 0x700   : > { %v1535_v42 = vpop.f32.mrb[17].mxu0  ;;  %v1556_v45 = vmul.f32 %v2843_v41, %v2586_v40  ;;  %v2774_v41 = vld [vmem:[%s3171_s22 + $0x34] ss:$8 sps:$4 sm:$0xff]  }
 0x701   : > { %v2587_v44 = vpop.f32.mrb[18].mxu0  ;;  %v1554_v60 = vmul.f32 %v2847_v56, %v1535_v42  ;;  %v2777_v42 = vld [vmem:[%s3176_s23 + $0x34] ss:$8 sps:$4 sm:$0xff]   ;;  %v2792_v56 = vld [vmem:[%s3171_s22 + $0x64] ss:$8 sps:$4 sm:$0xff]  }
 0x702   : > { %v1557_v46 = vmul.f32 %v2845_v43, %v2587_v44  ;;  %v1538_v51 = vpop.f32.mrb[19].mxu0  ;;  %v2772_v43 = vld [vmem:[%s3171_s22 + $0x30] ss:$8 sps:$4 sm:$0xff]  }
 0x703   : > { %v1555_v61 = vmul.f32 %v2849_v57, %v1538_v51  ;;  %v2775_v44 = vld [vmem:[%s3176_s23 + $0x30] ss:$8 sps:$4 sm:$0xff]   ;;  %v2778_v51 = vld [vmem:[%s3171_s22 + $0x40] ss:$8 sps:$4 sm:$0xff]   ;;  %v2795_v57 = vld [vmem:[%s3176_s23 + $0x64] ss:$8 sps:$4 sm:$0xff]  }
 0x704   : > { %v2664_v48 = vpack.i.bf16 %v1557_v46, %v1556_v45  ;;  %v2780_v45 = vld [vmem:[%s3171_s22 + $0x44] ss:$8 sps:$4 sm:$0xff]  }
 0x705   : > { %v2783_v46 = vld [vmem:[%s3176_s23 + $0x44] ss:$8 sps:$4 sm:$0xff]  }
 0x706   : > { %2665 = vrot.lane.b32.xlu1 %v2664_v48, %s2953_s9  ;;  %v2781_v48 = vld [vmem:[%s3176_s23 + $0x40] ss:$8 sps:$4 sm:$0xff]  }
 0x70a   : > { %2670 = vrot.lane.b32.xlu1 %v2669_v38, %s2953_s9 }
 0x778   : > { %v2666_v58 = vpop.permute.xlu1 %2665 }
 0x779   : > { %v2668_v62 = vunpack.i.h.bf16 %v2666_v58  ;;  %v2667_v63 = vunpack.i.l.bf16 %v2666_v58  ;;  %v2790_v58 = vld [vmem:[%s3171_s22 + $0x60] ss:$8 sps:$4 sm:$0xff]  }
 0x77b   : > { %v1567_v1 = vsel %vm1206_vm0, %v1555_v61, %v2668_v62  ;;  %v1566_v2 = vsel %vm1206_vm0, %v1554_v60, %v2667_v63  ;;  %v2798_v60 = vld [vmem:[%s3171_s22 + $0x74] ss:$8 sps:$4 sm:$0xff]   ;;  %v2796_v62 = vld [vmem:[%s3171_s22 + $0x70] ss:$8 sps:$4 sm:$0xff]  }
 0x77c   : > { %v1568_v3 = vpack.c.bf16 %v1567_v1, %v1566_v2  ;;  %v2671_v5 = vpop.permute.xlu1 %2670  ;;  %v2801_v61 = vld [vmem:[%s3176_s23 + $0x74] ss:$8 sps:$4 sm:$0xff]   ;;  %v2799_v63 = vld [vmem:[%s3176_s23 + $0x70] ss:$8 sps:$4 sm:$0xff]  }
 0x77d   : > { %v2673_v8 = vunpack.i.h.bf16 %v2671_v5  ;;  %v2672_v9 = vunpack.i.l.bf16 %v2671_v5 }
 0x77e   : > { %2597 = vmatmul.mubr.msk.bf16.vlgmr.msra.gmra.mrb[4].mxu1 %vm1601_vm15, %v1568_v3 }
 0x77f   : > { %v1380_v10 = vsel %vm1206_vm0, %v1368_v7, %v2673_v8  ;;  %v1379_v11 = vsel %vm1206_vm0, %v1367_v6, %v2672_v9  ;;  %2601 = vmatpush3.bf16.msra.mxu1 %v2750_v4  ;;  %2608 = vmatprep.mubr.msk.bf16.mxu1 %vm2955_vm14, %v2954_v27  ;;  %v2458_v9 = vld [vmem:[%s668_s16] ss:$0 sm:$0xff] }
 0x780   : > { %v1381_v47 = vpack.c.bf16 %v1380_v10, %v1379_v11  ;;  %2602 = vmatprep.subr.bf16.mxu1 %v2954_v27 }
 0x783   : > { %2603 = vmatpush3.bf16.msra.mxu1 %v2751_v12 }
 0x784   : > { %2604 = vmatprep.subr.bf16.mxu1 %v2954_v27 }
 0x787   : > { %2605 = vmatpush3.bf16.msra.mxu1 %v2752_v50  ;;  %v2802_v50 = vld [vmem:[%s3611_s18 + $0x40] sm:$0xff]  }
 0x788   : > { %2606 = vmatprep.subr.bf16.mxu1 %v2954_v27 }
 0x78b   : > { %2607 = vmatpush3.bf16.msra.mxu1 %v2753_v49  ;;  %v2803_v49 = vld [vmem:[%s3611_s18] sm:$0xff]  }
 0x78c   : > { %1975 = vmatprep.subr.bf16.mxu1 %v2759_v16  ;;  %v2807_v16 = vld [vmem:[%s3611_s18 + $0x10] sm:$0xff]  }
 0x78e   : > { %2609 = vmatmul.mubr.msk.bf16.vlgmr.msra.gmra.mrb[8].mxu1 %vm1601_vm15, %v1381_v47 }
 0x78f   : > { %2007 = vmatprep.mubr.bf16.mxu1 %v2949_v19  ;;  %1976 = vmatpush1.bf16.msra.mxu1 %v2757_v15  ;;  %v2766_v19 = vld [vmem:[%s3171_s22 + $0x20] ss:$8 sps:$4 sm:$0xff]   ;;  %v2806_v15 = vld [vmem:[%s3611_s18 + $0x50] sm:$0xff]  }
 0x790   : > { %1977 = vmatprep.subr.bf16.mxu1 %v2765_v18  ;;  %1841 = vmatpush1.bf16.msra.mxu0 %v2766_v19  ;;  %v2809_v18 = vld [vmem:[%s3611_s18 + $0x18] sm:$0xff]   ;;  %v2814_v19 = vld [vmem:[%s3611_s18 + $0x70] sm:$0xff]  }
 0x791   : > { %1842 = vmatprep.subr.bf16.mxu0 %v2774_v41 }
 0x793   : > { %1978 = vmatpush1.bf16.msra.mxu1 %v2763_v21  ;;  %v2811_v21 = vld [vmem:[%s3611_s18 + $0x20] sm:$0xff]  }
 0x794   : > { %1979 = vmatprep.subr.bf16.mxu1 %v2771_v23  ;;  %1843 = vmatpush1.bf16.msra.mxu0 %v2772_v43  ;;  %v2813_v23 = vld [vmem:[%s3611_s18 + $0x28] sm:$0xff]  }
 0x795   : > { %1844 = vmatprep.subr.bf16.mxu0 %v2780_v45 }
 0x797   : > { %1980 = vmatpush1.bf16.msra.mxu1 %v2769_v24  ;;  %v2815_v24 = vld [vmem:[%s3611_s18 + $0x30] sm:$0xff]  }
 0x798   : > { %1981 = vmatprep.subr.bf16.mxu1 %v2777_v42  ;;  %1845 = vmatpush1.bf16.msra.mxu0 %v2778_v51 }
 0x799   : > { %1846 = vmatprep.subr.bf16.mxu0 %v2786_v52 }
 0x79b   : > { %1982 = vmatpush1.bf16.msra.mxu1 %v2775_v44 }
 0x79c   : > { %1983 = vmatprep.subr.bf16.mxu1 %v2783_v46  ;;  %1847 = vmatpush1.bf16.msra.mxu0 %v2784_v54 }
 0x79d   : > { %1848 = vmatprep.subr.bf16.mxu0 %v2792_v56 }
 0x79f   : > { %1984 = vmatpush1.bf16.msra.mxu1 %v2781_v48 }
 0x7a0   : > { %1985 = vmatprep.subr.bf16.mxu1 %v2789_v53  ;;  %1849 = vmatpush1.bf16.msra.mxu0 %v2790_v58 }
 0x7a1   : > { %1850 = vmatprep.subr.bf16.mxu0 %v2798_v60 }
 0x7a3   : > { %1986 = vmatpush1.bf16.msra.mxu1 %v2787_v55 }
 0x7a4   : > { %1987 = vmatprep.subr.bf16.mxu1 %v2795_v57  ;;  %1851 = vmatpush1.bf16.msra.mxu0 %v2796_v62 }
 0x7a5   : > { %2542 = vmatprep.subr.bf16.mxu0 %v2802_v50 }
 0x7a7   : > { %1988 = vmatpush1.bf16.msra.mxu1 %v2793_v59 }
 0x7a8   : > { %1989 = vmatprep.subr.bf16.mxu1 %v2801_v61 }
 0x7ab   : > { %1990 = vmatpush1.bf16.msra.mxu1 %v2799_v63 }
 0x851   : > { %v1639_v25 = vpop.f32.mrb[4].mxu1 }
 0x852   : > { %v2598_v26 = vpop.f32.mrb[5].mxu1 }
 0x853   : > { %v1642_v27 = vpop.f32.mrb[6].mxu1  ;;  %v2817_v26 = vld [vmem:[%s3611_s18 + $0x38] sm:$0xff]  }
 0x854   : > { %v2599_v28 = vpop.f32.mrb[7].mxu1 }
 0x861   : > { %v1707_v29 = vpop.f32.mrb[8].mxu1 }
 0x862   : > { %v1708_v30 = vadd.f32 %v1707_v29, %v1639_v25  ;;  %v2610_v31 = vpop.f32.mrb[9].mxu1  ;;  %v2816_v25 = vld [vmem:[%s3611_s18 + $0x78] sm:$0xff]  }
 0x863   : > { %v1710_v32 = vpop.f32.mrb[10].mxu1 }
 0x864   : > { %v3487_v34 = vadd.f32 %v2874_v33, %v1708_v30  ;;  %v1711_v35 = vadd.f32 %v1710_v32, %v1642_v27  ;;  %v2611_v36 = vpop.f32.mrb[11].mxu1 }
 0x866   : > { %v3489_v38 = vadd.f32 %v2875_v37, %v1711_v35  ;;  %v1716_v39 = vmul.f32 %v3487_v34, %v3487_v34 }
 0x868   : > { %1718 = vadd.xlane.f32.xlu1 %v1716_v39  ;;  %v1717_v40 = vmul.f32 %v3489_v38, %v3489_v38 }
 0x86a   : > { %1720 = vadd.xlane.f32.xlu0 %v1717_v40 }
 0x8f5   : > { %v1719_v0 = vpop.xlane.xlu1 %1718 }
 0x8f6   : > { %v1722_v1 = vmul.f32 0.0078125, %v1719_v0 }
 0x8f7   : > { %v1721_v2 = vpop.xlane.xlu0 %1720 }
 0x8f8   : > { %v1724_v4 = vadd.f32 1e-05, %v1722_v1  ;;  %v1723_v3 = vmul.f32 0.0078125, %v1721_v2 }
 0x8fa   : > { %2854 = vrsqrt.f32 %v1724_v4  ;;  %v1725_v5 = vadd.f32 1e-05, %v1723_v3 }
 0x8fc   : > { %2856 = vrsqrt.f32 %v1725_v5 }
 0x904   : > { %v2855_v6 = vpop.eup %2854 }
 0x905   : > { %v1728_v7 = vmul.f32 %v2855_v6, %v3487_v34 }
 0x906   : > { %v2857_v8 = vpop.eup %2856 }
 0x907   : > { %v1729_v10 = vmul.f32 %v2857_v8, %v3489_v38  ;;  %v1737_v11 = vmul.f32 %v2458_v9, %v1728_v7 }
 0x909   : > { %v1738_v12 = vmul.f32 %v2458_v9, %v1729_v10 }
 0x90b   : > { %v1739_v47 = vpack.c.bf16 %v1738_v12, %v1737_v11 }
 0x90d   : > { %1869 = vmatmul.mubr.bf16.vlgmr.msra.gmra.mrb[20].mxu0 %v1739_v47  ;;  %2008 = vmatmul.mubr.bf16.vlgmr.msra.gmra.mrb[12].mxu1 %v1739_v47 }
 0x90e   : > { %2543 = vmatpush3.bf16.msra.mxu0 %v2803_v49 }
 0x90f   : > { %2544 = vmatprep.subr.bf16.mxu0 %v2804_v13 }
 0x912   : > { %2545 = vmatpush3.bf16.msra.mxu0 %v2805_v14 }
 0x913   : > { %2546 = vmatprep.subr.bf16.mxu0 %v2806_v15 }
 0x916   : > { %2547 = vmatpush3.bf16.msra.mxu0 %v2807_v16 }
 0x917   : > { %2548 = vmatprep.subr.bf16.mxu0 %v2808_v17 }
 0x91a   : > { %2549 = vmatpush3.bf16.msra.mxu0 %v2809_v18 }
 0x91b   : > { %2550 = vmatprep.subr.bf16.mxu0 %v2810_v20 }
 0x91e   : > { %2551 = vmatpush3.bf16.msra.mxu0 %v2811_v21 }
 0x91f   : > { %2552 = vmatprep.subr.bf16.mxu0 %v2812_v22 }
 0x922   : > { %2553 = vmatpush3.bf16.msra.mxu0 %v2813_v23 }
 0x923   : > { %2554 = vmatprep.subr.bf16.mxu0 %v2814_v19 }
 0x926   : > { %2555 = vmatpush3.bf16.msra.mxu0 %v2815_v24 }
 0x927   : > { %2556 = vmatprep.subr.bf16.mxu0 %v2816_v25 }
 0x92a   : > { %2557 = vmatpush3.bf16.msra.mxu0 %v2817_v26 }
 0x9e0   : > { %v1870_v27 = vpop.f32.mrb[20].mxu0  ;;  %v2009_v28 = vpop.f32.mrb[12].mxu1 }
 0x9e1   : > { %v2491_v29 = vmul.f32 -1.442695, %v1870_v27  ;;  %v1872_v30 = vpop.f32.mrb[21].mxu0  ;;  %v2011_v31 = vpop.f32.mrb[13].mxu1 }
 0x9e2   : > { %v2492_v32 = vmul.f32 -1.442695, %v1872_v30  ;;  %v1874_v33 = vpop.f32.mrb[22].mxu0  ;;  %v2013_v35 = vpop.f32.mrb[14].mxu1 }
 0x9e3   : > { %2858 = vpow2.f32 %v2491_v29  ;;  %v2493_v36 = vmul.f32 -1.442695, %v1874_v33  ;;  %v1876_v37 = vpop.f32.mrb[23].mxu0  ;;  %v2015_v39 = vpop.f32.mrb[15].mxu1 }
 0x9e4   : > { %2860 = vpow2.f32 %v2492_v32  ;;  %v2494_v40 = vmul.f32 -1.442695, %v1876_v37 }
 0x9e5   : > { %2862 = vpow2.f32 %v2493_v36 }
 0x9e6   : > { %2864 = vpow2.f32 %v2494_v40 }
 0x9ed   : > { %v2859_v41 = vpop.eup %2858 }
 0x9ee   : > { %v2861_v42 = vpop.eup %2860  ;;  %v2030_v43 = vadd.f32 1.0, %v2859_v41 }
 0x9ef   : > { %v2863_v44 = vpop.eup %2862  ;;  %v2031_v45 = vadd.f32 1.0, %v2861_v42 }
 0x9f0   : > { %v2865_v46 = vpop.eup %2864  ;;  %2866 = vrcp.f32 %v2030_v43  ;;  %v2032_v51 = vadd.f32 1.0, %v2863_v44 }
 0x9f1   : > { %2868 = vrcp.f32 %v2031_v45  ;;  %v2033_v48 = vadd.f32 1.0, %v2865_v46 }
 0x9f2   : > { %2870 = vrcp.f32 %v2032_v51 }
 0x9f3   : > { %2872 = vrcp.f32 %v2033_v48 }
 0x9fa   : > { %v2867_v52 = vpop.eup %2866 }
 0x9fb   : > { %v2869_v53 = vpop.eup %2868  ;;  %v2042_v54 = vmul.f32 %v2867_v52, %v1870_v27 }
 0x9fc   : > { %v2871_v55 = vpop.eup %2870  ;;  %v2043_v56 = vmul.f32 %v2869_v53, %v1872_v30 }
 0x9fd   : > { %v2873_v57 = vpop.eup %2872  ;;  %v2046_v58 = vmul.f32 %v2042_v54, %v2009_v28  ;;  %v2044_v59 = vmul.f32 %v2871_v55, %v1874_v33 }
 0x9fe   : > { %v2047_v60 = vmul.f32 %v2043_v56, %v2011_v31  ;;  %v2045_v61 = vmul.f32 %v2873_v57, %v1876_v37 }
 0x9ff   : > { %v2048_v62 = vmul.f32 %v2044_v59, %v2013_v35 }
 0xa00   : > { %v2049_v63 = vmul.f32 %v2045_v61, %v2015_v39 }
 0xa01   : > { %v2050_v0 = vpack.c.bf16 %v2048_v62, %v2046_v58 }
 0xa02   : > { %v2051_v1 = vpack.c.bf16 %v2049_v63, %v2047_v60 }
 0xa04   : > { %2212 = vmatprep.mubr.bf16.mxu0 %v2051_v1 }
 0xa05   : > { %2213 = vmatmul.mubr.bf16.vlgmr.msra.gmra.mrb[24].mxu0 %v2050_v0 }
 0xad8   : > { %v2558_v2 = vpop.f32.mrb[24].mxu0 }
 0xad9   : > { %v2559_v4 = vpop.f32.mrb[25].mxu0 }
 0xada   : > { %v2560_v3 = vadd.f32 %v2559_v4, %v2558_v2  ;;  %v2561_v5 = vpop.f32.mrb[26].mxu0  ;;  %2228 = sbr.rel (%p2511_p8) target bundleno = 2950 (0xb86), region = 100 }
 0xadb   : > { %v2562_v6 = vpop.f32.mrb[27].mxu0 }
 0xadc   : > { %v2221_v7 = vadd.f32 %v2560_v3, %v3487_v34  ;;  %v2563_v8 = vadd.f32 %v2562_v6, %v2561_v5 }
 0xade   : > { %2223 = vst [vmem:[#allocation2] sm:$0xff] %v2221_v7  ;;  %v2222_v9 = vadd.f32 %v2563_v8, %v3489_v38  ;;  %v2229_v10 = vmul.f32 (!%p2511_p8), %v2221_v7, %v2221_v7  ;;  %v2512_v38 = vld [vmem:[%s3612_s27] ss:$0 sm:$0xff] (!%p2511_p8) }
 0xae0   : > { %2224 = vst [vmem:[#allocation2 + $0x8] sm:$0xff] %v2222_v9  ;;  %2231 = vadd.xlane.f32.xlu0 (!%p2511_p8), %v2229_v10  ;;  %v2230_v11 = vmul.f32 (!%p2511_p8), %v2222_v9, %v2222_v9 }
 0xae4   : > { %2233 = vadd.xlane.f32.xlu0 %v2230_v11 }
 0xb6d   : > { %v2232_v12 = vpop.xlane.xlu0 %2231 }
 0xb6e   : > { %v2235_v47 = vmul.f32 0.0078125, %v2232_v12 }
 0xb70   : > { %v2237_v50 = vadd.f32 1e-05, %v2235_v47 }
 0xb71   : > { %v2234_v49 = vpop.xlane.xlu0 %2233 }
 0xb72   : > { %2876 = vrsqrt.f32 %v2237_v50  ;;  %v2236_v13 = vmul.f32 0.0078125, %v2234_v49 }
 0xb74   : > { %v2238_v14 = vadd.f32 1e-05, %v2236_v13 }
 0xb76   : > { %2878 = vrsqrt.f32 %v2238_v14 }
 0xb7c   : > { %v2877_v34 = vpop.eup %2876 }
 0xb7d   : > { %v2241_v15 = vmul.f32 %v2877_v34, %v2221_v7 }
 0xb7f   : > { %v2250_v16 = vmul.f32 %v2512_v38, %v2241_v15 }
 0xb80   : > { %v2879_v17 = vpop.eup %2878 }
 0xb81   : > { %2252 = vst [vmem:[%s3613_s21] sm:$0xff] %v2250_v16  ;;  %v2242_v18 = vmul.f32 %v2879_v17, %v2222_v9 }
 0xb83   : > { %v2251_v20 = vmul.f32 %v2512_v38, %v2242_v18 }
 0xb85   : > { %2253 = vst [vmem:[%s3613_s21 + $0x8] sm:$0xff] %v2251_v20 }
 0xb86 PF: > { %s3614_s27 = sld [smem:[#allocation8_spill]]  ;;  %s3615_s24 = sld [smem:[#allocation6_spill]] }
 0xb87   : > { %s3616_s25 = sld [smem:[#allocation7_spill]]  ;;  %s3617_s26 = sld [smem:[#allocation9_spill]] }
 0xb8c   : > { %p27_p4 = scmp.ge.s32.totalorder %s3614_s27, 4  }
 0xb8e   :  { %29 = sbr.rel (!%p27_p4) target bundleno = 11 (0xb), region = 153 }
 0xb95   :  { %2265 = vsyncpa [#allocation4], 1 }
 0xb96   :  { %2267 = vsyncpa [#allocation4 + $0x1], 1 }

</bundles_post_ra>
